<compile_context>
chip_gen: v6e
topology: v6e:2x2x1
jax: 0.10.0
libtpu: 0.0.40
codegen_flags: <defaults>
</compile_context>

<pallas_src>
import functools
import math

import numpy as np

import jax
import jax.numpy as jnp
from jax.experimental import pallas as pl
from jax.experimental.pallas import tpu as pltpu


# ---------------------------------------------------------------------------
# kernel: full encoder stack; grid = (batch, layer), layer innermost
# ---------------------------------------------------------------------------
def encoder_stack_kernel(x0_ref, bias_ref,
                         wqkv_ref, bqkv_ref, wo_ref, bo_ref,
                         g1_ref, be1_ref, w1_ref, b1_ref,
                         w2_ref, b2_ref, g2_ref, be2_ref,
                         o_ref, *, num_heads):
    layer = pl.program_id(1)

    # Grid step (b, 0): initialize the resident activation block from x0.
    @pl.when(layer == 0)
    def _():
        o_ref[...] = x0_ref[...]

    _, S, D = o_ref.shape
    H = num_heads
    hd = D // H

    x = o_ref[...].reshape(S, D)                     # f32 residual stream (VMEM-resident)
    xb = x.astype(jnp.bfloat16)

    # ----- fused QKV projection (1/sqrt(hd) pre-folded into the Q columns) -----
    qkv = jnp.dot(xb, wqkv_ref[...],
                  preferred_element_type=jnp.float32) + bqkv_ref[...]    # (S, 3D) f32

    q = qkv[:, :D].astype(jnp.bfloat16)
    k = qkv[:, D:2 * D].astype(jnp.bfloat16)
    v = qkv[:, 2 * D:].astype(jnp.bfloat16)

    # Head split: a single layout permutation per tensor (no per-head slices/concats).
    qh = pltpu.einshape("shd->hsd", q.reshape(S, H, hd))                 # (H, S, hd)
    kh = pltpu.einshape("shd->hsd", k.reshape(S, H, hd))
    vh = pltpu.einshape("shd->hsd", v.reshape(S, H, hd))

    # ----- multi-head attention, batched over heads -----
    s = jnp.einsum('hqd,hkd->hqk', qh, kh,
                   preferred_element_type=jnp.float32)                   # (H, S, S) f32
    s = s + bias_ref[...]                    # (1,1,S) additive key-padding bias, bcast
    m = jnp.max(s, axis=-1, keepdims=True)   # stable softmax
    p = jnp.exp(s - m)
    l = jnp.sum(p, axis=-1, keepdims=True)                               # (H, S, 1)

    ctx = jnp.einsum('hqk,hkd->hqd', p.astype(jnp.bfloat16), vh,
                     preferred_element_type=jnp.float32)                 # (H, S, hd) f32
    # Deferred softmax normalization on the small ctx tensor (EUP reciprocal).
    # NOTE: approx=True is not bit-exact vs a true divide; use approx=False for
    # tight parity with a PyTorch reference.
    ctx = ctx * pl.reciprocal(l, approx=True)

    # Head merge: single layout permutation, then output projection.
    attn = pltpu.einshape("hsd->shd", ctx).reshape(S, D)
    attn = jnp.dot(attn.astype(jnp.bfloat16), wo_ref[...],
                   preferred_element_type=jnp.float32) + bo_ref[...]

    def _ln(y, g, b):                                  # f32 LayerNorm, eps=1e-5
        mu = jnp.mean(y, axis=-1, keepdims=True)
        var = jnp.mean(jnp.square(y - mu), axis=-1, keepdims=True)
        return (y - mu) * jax.lax.rsqrt(var + jnp.float32(1e-5)) * g + b

    # residual + LayerNorm1 (dropout == identity in eval mode)
    y = _ln(x + attn, g1_ref[...], be1_ref[...])

    # ----- feed-forward (ReLU), bf16 operands / f32 accumulate -----
    h1 = jnp.dot(y.astype(jnp.bfloat16), w1_ref[...],
                 preferred_element_type=jnp.float32) + b1_ref[...]
    h1 = jnp.maximum(h1, 0.0)
    f = jnp.dot(h1.astype(jnp.bfloat16), w2_ref[...],
                preferred_element_type=jnp.float32) + b2_ref[...]

    # residual + LayerNorm2; write back into the resident activation block
    z = _ln(y + f, g2_ref[...], be2_ref[...])
    o_ref[...] = z.reshape(1, S, D)


# ---------------------------------------------------------------------------
# wrapper: whole Encoder.forward in one pallas_call
# ---------------------------------------------------------------------------
def encoder_forward(tokens, mask, params, pe, d_model, num_heads):
    B, S = tokens.shape
    D = d_model
    lw = params['layers']
    L = lw['wqkv'].shape[0]

    # x0 = Embedding(tokens) * sqrt(d_model) + PositionalEncoding (plain-JAX glue;
    # XLA fuses the scale/add with the vocab gather).
    x0 = params['embedding'][tokens] * jnp.float32(math.sqrt(D)) + pe    # (B, S, D) f32

    # Additive key-padding bias, (B, 1, S); broadcast over heads/queries in-kernel.
    bias = jnp.where(mask, jnp.float32(-1e30), jnp.float32(0.0))[:, None, :]

    inputs = [x0, bias,
              lw['wqkv'], lw['bqkv'], lw['wo'], lw['bo'],
              lw['g1'], lw['be1'], lw['w1'], lw['b1'],
              lw['w2'], lw['b2'], lw['g2'], lw['be2']]

    def batch_spec(arr):               # per-batch-element block, constant over layers
        tail = arr.shape[1:]
        nz = len(tail)
        return pl.BlockSpec((1,) + tail, lambda b, l, nz=nz: (b,) + (0,) * nz)

    def stacked_spec(arr):             # per-layer weight slab, streamed over the l axis
        tail = arr.shape[1:]
        nz = len(tail)
        return pl.BlockSpec((None,) + tail, lambda b, l, nz=nz: (l,) + (0,) * nz)

    in_specs = ([batch_spec(x0), batch_spec(bias)]
                + [stacked_spec(a) for a in inputs[2:]])

    return pl.pallas_call(
        functools.partial(encoder_stack_kernel, num_heads=num_heads),
        grid=(B, L),                                     # batch outer, layer inner
        in_specs=in_specs,
        # Output block index is constant in l -> activation stays resident in VMEM
        # across the whole layer stack; written to HBM once per batch element.
        out_specs=pl.BlockSpec((1, S, D), lambda b, l: (b, 0, 0)),
        out_shape=jax.ShapeDtypeStruct((B, S, D), jnp.float32),
        compiler_params=pltpu.CompilerParams(
            dimension_semantics=("parallel", "arbitrary")),   # batch over v7x's 2 TCs
    )(*inputs)


# ---------------------------------------------------------------------------
# parameter construction (deterministic, synthetic; weights stacked over layers)
# ---------------------------------------------------------------------------
def make_positional_encoding(max_seq_len, d_model):
    # Exact replica of the PyTorch loop formula (including the i+1 exponent).
    pe = np.zeros((max_seq_len, d_model), np.float32)
    for pos in range(max_seq_len):
        for i in range(0, d_model, 2):
            pe[pos, i] = math.sin(pos / 10000 ** (2 * i / d_model))
            pe[pos, i + 1] = math.cos(pos / 10000 ** (2 * (i + 1) / d_model))
    return jnp.asarray(pe)[None]                                    # (1, S, D)


def init_params(key, vocab_size, d_model, ffn_hidden, num_layers, num_heads):
    D, F, L, H = d_model, ffn_hidden, num_layers, num_heads
    hd = D // H
    ks = jax.random.split(key, 7)
    s = 0.05
    emb = 0.02 * jax.random.normal(ks[0], (vocab_size, D), jnp.float32)

    # Fold the 1/sqrt(hd) attention scale into the Q columns (done once in f32,
    # then cast to bf16).  QKV biases are zero here; a nonzero Q bias would need
    # the same folding.
    wq = s * jax.random.normal(ks[1], (L, D, D), jnp.float32) * (1.0 / math.sqrt(hd))
    wk = s * jax.random.normal(ks[2], (L, D, D), jnp.float32)
    wv = s * jax.random.normal(ks[3], (L, D, D), jnp.float32)

    layers = dict(
        # matmul weights stored (in_dim, out_dim), bf16 operands (f32 accumulate in-kernel)
        wqkv=jnp.concatenate([wq, wk, wv], axis=-1).astype(jnp.bfloat16),   # (L, D, 3D)
        bqkv=jnp.zeros((L, 1, 3 * D), jnp.float32),
        wo=(s * jax.random.normal(ks[4], (L, D, D), jnp.float32)).astype(jnp.bfloat16),
        bo=jnp.zeros((L, 1, D), jnp.float32),
        g1=jnp.ones((L, 1, D), jnp.float32),
        be1=jnp.zeros((L, 1, D), jnp.float32),
        w1=(s * jax.random.normal(ks[5], (L, D, F), jnp.float32)).astype(jnp.bfloat16),
        b1=jnp.zeros((L, 1, F), jnp.float32),
        w2=(s * jax.random.normal(ks[6], (L, F, D), jnp.float32)).astype(jnp.bfloat16),
        b2=jnp.zeros((L, 1, D), jnp.float32),
        g2=jnp.ones((L, 1, D), jnp.float32),
        be2=jnp.zeros((L, 1, D), jnp.float32),
    )
    return dict(embedding=emb, layers=layers)


# ---------------------------------------------------------------------------
# main
# ---------------------------------------------------------------------------
if __name__ == "__main__":
    # Config analogous to the PyTorch module's config dict (small synthetic sizes;
    # d_model / ffn_hidden chosen as multiples of 128 for lane-dense layouts).
    config = {
        'input_embedding': {'n_peaks': 8, 'decimal_accuracy': 1, 'max_mz': 100},
        'transformer': {'d_model': 128, 'num_heads': 4, 'ffn_hidden': 256,
                        'num_layers': 2, 'dropout': 0.0},
    }
    B = 2
    S = config['input_embedding']['n_peaks']
    D = config['transformer']['d_model']
    H = config['transformer']['num_heads']
    F = config['transformer']['ffn_hidden']
    L = config['transformer']['num_layers']
    vocab_size = (config['input_embedding']['max_mz']
                  * 10 ** config['input_embedding']['decimal_accuracy'])

    key = jax.random.PRNGKey(0)
    k_tok, k_par = jax.random.split(key)

    tokens = jax.random.randint(k_tok, (B, S), 0, vocab_size, dtype=jnp.int32)
    # src_key_padding_mask: True == padding position (ignored as attention key)
    mask = jnp.array([[False] * S,
                      [False] * (S - 2) + [True] * 2], dtype=jnp.bool_)

    params = init_params(k_par, vocab_size, D, F, L, H)
    pe = make_positional_encoding(S, D)

    out = encoder_forward(tokens, mask, params, pe, D, H)
    out = jax.block_until_ready(out)

    assert out.shape == (B, S, D), out.shape
    assert bool(jnp.all(jnp.isfinite(out)))
    print("KERNEL_OK")
</pallas_src>

<mosaic_0001>
module attributes {stable_mosaic.version = 11 : i64} {
  func.func @encoder_stack_kernel(%arg0: i32, %arg1: i32, %arg2: memref<1x8x128xf32, #tpu.memory_space<vmem>>, %arg3: memref<1x1x8xf32, #tpu.memory_space<vmem>>, %arg4: memref<1x128x384xbf16, #tpu.memory_space<vmem>>, %arg5: memref<1x1x384xf32, #tpu.memory_space<vmem>>, %arg6: memref<1x128x128xbf16, #tpu.memory_space<vmem>>, %arg7: memref<1x1x128xf32, #tpu.memory_space<vmem>>, %arg8: memref<1x1x128xf32, #tpu.memory_space<vmem>>, %arg9: memref<1x1x128xf32, #tpu.memory_space<vmem>>, %arg10: memref<1x128x256xbf16, #tpu.memory_space<vmem>>, %arg11: memref<1x1x256xf32, #tpu.memory_space<vmem>>, %arg12: memref<1x256x128xbf16, #tpu.memory_space<vmem>>, %arg13: memref<1x1x128xf32, #tpu.memory_space<vmem>>, %arg14: memref<1x1x128xf32, #tpu.memory_space<vmem>>, %arg15: memref<1x1x128xf32, #tpu.memory_space<vmem>>, %arg16: memref<1x8x128xf32, #tpu.memory_space<vmem>>) attributes {dimension_semantics = [#tpu.dimension_semantics<parallel>, #tpu.dimension_semantics<arbitrary>], iteration_bounds = array<i64: 2, 2>, scalar_prefetch = 0 : i64, scratch_operands = 0 : i64, tpu.core_type = #tpu.core_type<tc>, window_params = [{transform_indices = @transform_0, window_bounds = array<i64: 1, 8, 128>}, {transform_indices = @transform_1, window_bounds = array<i64: 1, 1, 8>}, {transform_indices = @transform_2, window_bounds = array<i64: 1, 128, 384>}, {transform_indices = @transform_3, window_bounds = array<i64: 1, 1, 384>}, {transform_indices = @transform_4, window_bounds = array<i64: 1, 128, 128>}, {transform_indices = @transform_5, window_bounds = array<i64: 1, 1, 128>}, {transform_indices = @transform_6, window_bounds = array<i64: 1, 1, 128>}, {transform_indices = @transform_7, window_bounds = array<i64: 1, 1, 128>}, {transform_indices = @transform_8, window_bounds = array<i64: 1, 128, 256>}, {transform_indices = @transform_9, window_bounds = array<i64: 1, 1, 256>}, {transform_indices = @transform_10, window_bounds = array<i64: 1, 256, 128>}, {transform_indices = @transform_11, window_bounds = array<i64: 1, 1, 128>}, {transform_indices = @transform_12, window_bounds = array<i64: 1, 1, 128>}, {transform_indices = @transform_13, window_bounds = array<i64: 1, 1, 128>}, {transform_indices = @transform_14, window_bounds = array<i64: 1, 8, 128>}]} {
    %c0_i32 = arith.constant 0 : i32
    %0 = arith.cmpi eq, %arg1, %c0_i32 : i32
    %1 = arith.extui %0 : i1 to i32
    %c0_i32_0 = arith.constant 0 : i32
    %2 = arith.cmpi ne, %1, %c0_i32_0 : i32
    scf.if %2 {
      %c0_63 = arith.constant 0 : index
      %c0_64 = arith.constant 0 : index
      %c0_65 = arith.constant 0 : index
      %125 = vector.load %arg2[%c0_63, %c0_64, %c0_65] : memref<1x8x128xf32, #tpu.memory_space<vmem>>, vector<1x8x128xf32>
      %c0_66 = arith.constant 0 : index
      %c0_67 = arith.constant 0 : index
      %c0_68 = arith.constant 0 : index
      %126 = vector.load %arg16[%c0_66, %c0_67, %c0_68] : memref<1x8x128xf32, #tpu.memory_space<vmem>>, vector<1x8x128xf32>
      tpu.vector_store %arg16[%c0_66, %c0_67, %c0_68], %125 {strides = array<i32>} : memref<1x8x128xf32, #tpu.memory_space<vmem>>, vector<1x8x128xf32>,
    } else {
    }
    %c0 = arith.constant 0 : index
    %c0_1 = arith.constant 0 : index
    %c0_2 = arith.constant 0 : index
    %3 = vector.load %arg16[%c0, %c0_1, %c0_2] : memref<1x8x128xf32, #tpu.memory_space<vmem>>, vector<1x8x128xf32>
    %4 = vector.shape_cast %3 : vector<1x8x128xf32> to vector<8x128xf32>
    %5 = arith.truncf %4 : vector<8x128xf32> to vector<8x128xbf16>
    %c0_3 = arith.constant 0 : index
    %c0_4 = arith.constant 0 : index
    %c0_5 = arith.constant 0 : index
    %6 = vector.load %arg4[%c0_3, %c0_4, %c0_5] : memref<1x128x384xbf16, #tpu.memory_space<vmem>>, vector<1x128x384xbf16>
    %7 = vector.shape_cast %6 : vector<1x128x384xbf16> to vector<128x384xbf16>
    %cst = arith.constant dense<0.000000e+00> : vector<8x384xf32>
    %8 = tpu.matmul %5, %7, %cst {dimension_numbers = #tpu.dot_dimension_numbers<[1], [0], [0], [1], [0, 0, 1, 1], [], []>} : vector<8x128xbf16>, vector<128x384xbf16>, vector<8x384xf32> -> vector<8x384xf32>
    %c0_6 = arith.constant 0 : index
    %c0_7 = arith.constant 0 : index
    %c0_8 = arith.constant 0 : index
    %9 = vector.load %arg5[%c0_6, %c0_7, %c0_8] : memref<1x1x384xf32, #tpu.memory_space<vmem>>, vector<1x1x384xf32>
    %10 = vector.shape_cast %9 : vector<1x1x384xf32> to vector<1x384xf32>
    %11 = vector.broadcast %10 : vector<1x384xf32> to vector<8x384xf32>
    %12 = arith.addf %8, %11 : vector<8x384xf32>
    %13 = vector.extract_strided_slice %12 {offsets = [0, 0], sizes = [8, 128], strides = [1, 1]} : vector<8x384xf32> to vector<8x128xf32>
    %14 = arith.truncf %13 : vector<8x128xf32> to vector<8x128xbf16>
    %15 = vector.extract_strided_slice %12 {offsets = [0, 128], sizes = [8, 128], strides = [1, 1]} : vector<8x384xf32> to vector<8x128xf32>
    %16 = arith.truncf %15 : vector<8x128xf32> to vector<8x128xbf16>
    %17 = vector.extract_strided_slice %12 {offsets = [0, 256], sizes = [8, 128], strides = [1, 1]} : vector<8x384xf32> to vector<8x128xf32>
    %18 = arith.truncf %17 : vector<8x128xf32> to vector<8x128xbf16>
    %19 = vector.shape_cast %14 : vector<8x128xbf16> to vector<8x4x32xbf16>
    %20 = tpu.transpose %19, [1, 0, 2] : vector<8x4x32xbf16> -> vector<4x8x32xbf16>
    %21 = vector.shape_cast %16 : vector<8x128xbf16> to vector<8x4x32xbf16>
    %22 = tpu.transpose %21, [1, 0, 2] : vector<8x4x32xbf16> -> vector<4x8x32xbf16>
    %23 = vector.shape_cast %18 : vector<8x128xbf16> to vector<8x4x32xbf16>
    %24 = tpu.transpose %23, [1, 0, 2] : vector<8x4x32xbf16> -> vector<4x8x32xbf16>
    "tpu.trace_start"() <{level = 10 : i32, message = "hqd,hkd->hqk"}> : () -> ()
    %cst_9 = arith.constant dense<0.000000e+00> : vector<4x8x8xf32>
    %25 = tpu.matmul %20, %22, %cst_9 {dimension_numbers = #tpu.dot_dimension_numbers<[2], [2], [1], [1], [0, 0, 0, 1, 1, 1], [0], [0]>} : vector<4x8x32xbf16>, vector<4x8x32xbf16>, vector<4x8x8xf32> -> vector<4x8x8xf32>
    "tpu.trace_stop"() : () -> ()
    %c0_10 = arith.constant 0 : index
    %c0_11 = arith.constant 0 : index
    %c0_12 = arith.constant 0 : index
    %26 = vector.load %arg3[%c0_10, %c0_11, %c0_12] : memref<1x1x8xf32, #tpu.memory_space<vmem>>, vector<1x1x8xf32>
    %27 = vector.broadcast %26 : vector<1x1x8xf32> to vector<4x8x8xf32>
    %28 = arith.addf %25, %27 : vector<4x8x8xf32>
    %cst_13 = arith.constant dense<0xFF800000> : vector<4x8xf32>
    %29 = vector.multi_reduction <maximumf>, %28, %cst_13 [2] : vector<4x8x8xf32> to vector<4x8xf32>
    %30 = vector.shape_cast %29 : vector<4x8xf32> to vector<4x8x1xf32>
    %31 = vector.broadcast %30 : vector<4x8x1xf32> to vector<4x8x8xf32>
    %32 = arith.subf %28, %31 : vector<4x8x8xf32>
    %33 = math.exp %32 : vector<4x8x8xf32>
    %cst_14 = arith.constant dense<0.000000e+00> : vector<4x8xf32>
    %34 = vector.multi_reduction <add>, %33, %cst_14 [2] : vector<4x8x8xf32> to vector<4x8xf32>
    %35 = vector.shape_cast %34 : vector<4x8xf32> to vector<4x8x1xf32>
    %36 = arith.truncf %33 : vector<4x8x8xf32> to vector<4x8x8xbf16>
    "tpu.trace_start"() <{level = 10 : i32, message = "hqk,hkd->hqd"}> : () -> ()
    %cst_15 = arith.constant dense<0.000000e+00> : vector<4x8x32xf32>
    %37 = tpu.matmul %36, %24, %cst_15 {dimension_numbers = #tpu.dot_dimension_numbers<[2], [1], [1], [2], [0, 0, 0, 1, 1, 2], [0], [0]>} : vector<4x8x8xbf16>, vector<4x8x32xbf16>, vector<4x8x32xf32> -> vector<4x8x32xf32>
    "tpu.trace_stop"() : () -> ()
    %38 = tpu.reciprocal %35 {approx = true} : vector<4x8x1xf32> -> vector<4x8x1xf32>
    %39 = vector.broadcast %38 : vector<4x8x1xf32> to vector<4x8x32xf32>
    %40 = arith.mulf %37, %39 : vector<4x8x32xf32>
    %41 = tpu.transpose %40, [1, 0, 2] : vector<4x8x32xf32> -> vector<8x4x32xf32>
    %42 = vector.shape_cast %41 : vector<8x4x32xf32> to vector<8x128xf32>
    %43 = arith.truncf %42 : vector<8x128xf32> to vector<8x128xbf16>
    %c0_16 = arith.constant 0 : index
    %c0_17 = arith.constant 0 : index
    %c0_18 = arith.constant 0 : index
    %44 = vector.load %arg6[%c0_16, %c0_17, %c0_18] : memref<1x128x128xbf16, #tpu.memory_space<vmem>>, vector<1x128x128xbf16>
    %45 = vector.shape_cast %44 : vector<1x128x128xbf16> to vector<128x128xbf16>
    %cst_19 = arith.constant dense<0.000000e+00> : vector<8x128xf32>
    %46 = tpu.matmul %43, %45, %cst_19 {dimension_numbers = #tpu.dot_dimension_numbers<[1], [0], [0], [1], [0, 0, 1, 1], [], []>} : vector<8x128xbf16>, vector<128x128xbf16>, vector<8x128xf32> -> vector<8x128xf32>
    %c0_20 = arith.constant 0 : index
    %c0_21 = arith.constant 0 : index
    %c0_22 = arith.constant 0 : index
    %47 = vector.load %arg7[%c0_20, %c0_21, %c0_22] : memref<1x1x128xf32, #tpu.memory_space<vmem>>, vector<1x1x128xf32>
    %48 = vector.shape_cast %47 : vector<1x1x128xf32> to vector<1x128xf32>
    %49 = vector.broadcast %48 : vector<1x128xf32> to vector<8x128xf32>
    %50 = arith.addf %46, %49 : vector<8x128xf32>
    %51 = arith.addf %4, %50 : vector<8x128xf32>
    %c0_23 = arith.constant 0 : index
    %c0_24 = arith.constant 0 : index
    %c0_25 = arith.constant 0 : index
    %52 = vector.load %arg8[%c0_23, %c0_24, %c0_25] : memref<1x1x128xf32, #tpu.memory_space<vmem>>, vector<1x1x128xf32>
    %53 = vector.shape_cast %52 : vector<1x1x128xf32> to vector<1x128xf32>
    %c0_26 = arith.constant 0 : index
    %c0_27 = arith.constant 0 : index
    %c0_28 = arith.constant 0 : index
    %54 = vector.load %arg9[%c0_26, %c0_27, %c0_28] : memref<1x1x128xf32, #tpu.memory_space<vmem>>, vector<1x1x128xf32>
    %55 = vector.shape_cast %54 : vector<1x1x128xf32> to vector<1x128xf32>
    %cst_29 = arith.constant dense<0.000000e+00> : vector<8xf32>
    %56 = vector.multi_reduction <add>, %51, %cst_29 [1] : vector<8x128xf32> to vector<8xf32>
    %57 = vector.shape_cast %56 : vector<8xf32> to vector<8x1xf32>
    %cst_30 = arith.constant 1.280000e+02 : f32
    %58 = vector.broadcast %cst_30 : f32 to vector<8x1xf32>
    %59 = arith.divf %57, %58 : vector<8x1xf32>
    %60 = vector.broadcast %59 : vector<8x1xf32> to vector<8x128xf32>
    %61 = arith.subf %51, %60 : vector<8x128xf32>
    %62 = arith.mulf %61, %61 : vector<8x128xf32>
    %cst_31 = arith.constant dense<0.000000e+00> : vector<8xf32>
    %63 = vector.multi_reduction <add>, %62, %cst_31 [1] : vector<8x128xf32> to vector<8xf32>
    %64 = vector.shape_cast %63 : vector<8xf32> to vector<8x1xf32>
    %cst_32 = arith.constant 1.280000e+02 : f32
    %65 = vector.broadcast %cst_32 : f32 to vector<8x1xf32>
    %66 = arith.divf %64, %65 : vector<8x1xf32>
    %67 = vector.broadcast %59 : vector<8x1xf32> to vector<8x128xf32>
    %68 = arith.subf %51, %67 : vector<8x128xf32>
    %cst_33 = arith.constant 9.99999974E-6 : f32
    %69 = vector.broadcast %cst_33 : f32 to vector<8x1xf32>
    %70 = arith.addf %66, %69 : vector<8x1xf32>
    %71 = math.rsqrt %70 : vector<8x1xf32>
    %72 = vector.broadcast %71 : vector<8x1xf32> to vector<8x128xf32>
    %73 = arith.mulf %68, %72 : vector<8x128xf32>
    %74 = vector.broadcast %53 : vector<1x128xf32> to vector<8x128xf32>
    %75 = arith.mulf %73, %74 : vector<8x128xf32>
    %76 = vector.broadcast %55 : vector<1x128xf32> to vector<8x128xf32>
    %77 = arith.addf %75, %76 : vector<8x128xf32>
    %78 = arith.truncf %77 : vector<8x128xf32> to vector<8x128xbf16>
    %c0_34 = arith.constant 0 : index
    %c0_35 = arith.constant 0 : index
    %c0_36 = arith.constant 0 : index
    %79 = vector.load %arg10[%c0_34, %c0_35, %c0_36] : memref<1x128x256xbf16, #tpu.memory_space<vmem>>, vector<1x128x256xbf16>
    %80 = vector.shape_cast %79 : vector<1x128x256xbf16> to vector<128x256xbf16>
    %cst_37 = arith.constant dense<0.000000e+00> : vector<8x256xf32>
    %81 = tpu.matmul %78, %80, %cst_37 {dimension_numbers = #tpu.dot_dimension_numbers<[1], [0], [0], [1], [0, 0, 1, 1], [], []>} : vector<8x128xbf16>, vector<128x256xbf16>, vector<8x256xf32> -> vector<8x256xf32>
    %c0_38 = arith.constant 0 : index
    %c0_39 = arith.constant 0 : index
    %c0_40 = arith.constant 0 : index
    %82 = vector.load %arg11[%c0_38, %c0_39, %c0_40] : memref<1x1x256xf32, #tpu.memory_space<vmem>>, vector<1x1x256xf32>
    %83 = vector.shape_cast %82 : vector<1x1x256xf32> to vector<1x256xf32>
    %84 = vector.broadcast %83 : vector<1x256xf32> to vector<8x256xf32>
    %85 = arith.addf %81, %84 : vector<8x256xf32>
    %cst_41 = arith.constant 0.000000e+00 : f32
    %86 = vector.broadcast %cst_41 : f32 to vector<8x256xf32>
    %87 = arith.maximumf %85, %86 : vector<8x256xf32>
    %88 = arith.truncf %87 : vector<8x256xf32> to vector<8x256xbf16>
    %c0_42 = arith.constant 0 : index
    %c0_43 = arith.constant 0 : index
    %c0_44 = arith.constant 0 : index
    %89 = vector.load %arg12[%c0_42, %c0_43, %c0_44] : memref<1x256x128xbf16, #tpu.memory_space<vmem>>, vector<1x256x128xbf16>
    %90 = vector.shape_cast %89 : vector<1x256x128xbf16> to vector<256x128xbf16>
    %cst_45 = arith.constant dense<0.000000e+00> : vector<8x128xf32>
    %91 = tpu.matmul %88, %90, %cst_45 {dimension_numbers = #tpu.dot_dimension_numbers<[1], [0], [0], [1], [0, 0, 1, 1], [], []>} : vector<8x256xbf16>, vector<256x128xbf16>, vector<8x128xf32> -> vector<8x128xf32>
    %c0_46 = arith.constant 0 : index
    %c0_47 = arith.constant 0 : index
    %c0_48 = arith.constant 0 : index
    %92 = vector.load %arg13[%c0_46, %c0_47, %c0_48] : memref<1x1x128xf32, #tpu.memory_space<vmem>>, vector<1x1x128xf32>
    %93 = vector.shape_cast %92 : vector<1x1x128xf32> to vector<1x128xf32>
    %94 = vector.broadcast %93 : vector<1x128xf32> to vector<8x128xf32>
    %95 = arith.addf %91, %94 : vector<8x128xf32>
    %96 = arith.addf %77, %95 : vector<8x128xf32>
    %c0_49 = arith.constant 0 : index
    %c0_50 = arith.constant 0 : index
    %c0_51 = arith.constant 0 : index
    %97 = vector.load %arg14[%c0_49, %c0_50, %c0_51] : memref<1x1x128xf32, #tpu.memory_space<vmem>>, vector<1x1x128xf32>
    %98 = vector.shape_cast %97 : vector<1x1x128xf32> to vector<1x128xf32>
    %c0_52 = arith.constant 0 : index
    %c0_53 = arith.constant 0 : index
    %c0_54 = arith.constant 0 : index
    %99 = vector.load %arg15[%c0_52, %c0_53, %c0_54] : memref<1x1x128xf32, #tpu.memory_space<vmem>>, vector<1x1x128xf32>
    %100 = vector.shape_cast %99 : vector<1x1x128xf32> to vector<1x128xf32>
    %cst_55 = arith.constant dense<0.000000e+00> : vector<8xf32>
    %101 = vector.multi_reduction <add>, %96, %cst_55 [1] : vector<8x128xf32> to vector<8xf32>
    %102 = vector.shape_cast %101 : vector<8xf32> to vector<8x1xf32>
    %cst_56 = arith.constant 1.280000e+02 : f32
    %103 = vector.broadcast %cst_56 : f32 to vector<8x1xf32>
    %104 = arith.divf %102, %103 : vector<8x1xf32>
    %105 = vector.broadcast %104 : vector<8x1xf32> to vector<8x128xf32>
    %106 = arith.subf %96, %105 : vector<8x128xf32>
    %107 = arith.mulf %106, %106 : vector<8x128xf32>
    %cst_57 = arith.constant dense<0.000000e+00> : vector<8xf32>
    %108 = vector.multi_reduction <add>, %107, %cst_57 [1] : vector<8x128xf32> to vector<8xf32>
    %109 = vector.shape_cast %108 : vector<8xf32> to vector<8x1xf32>
    %cst_58 = arith.constant 1.280000e+02 : f32
    %110 = vector.broadcast %cst_58 : f32 to vector<8x1xf32>
    %111 = arith.divf %109, %110 : vector<8x1xf32>
    %112 = vector.broadcast %104 : vector<8x1xf32> to vector<8x128xf32>
    %113 = arith.subf %96, %112 : vector<8x128xf32>
    %cst_59 = arith.constant 9.99999974E-6 : f32
    %114 = vector.broadcast %cst_59 : f32 to vector<8x1xf32>
    %115 = arith.addf %111, %114 : vector<8x1xf32>
    %116 = math.rsqrt %115 : vector<8x1xf32>
    %117 = vector.broadcast %116 : vector<8x1xf32> to vector<8x128xf32>
    %118 = arith.mulf %113, %117 : vector<8x128xf32>
    %119 = vector.broadcast %98 : vector<1x128xf32> to vector<8x128xf32>
    %120 = arith.mulf %118, %119 : vector<8x128xf32>
    %121 = vector.broadcast %100 : vector<1x128xf32> to vector<8x128xf32>
    %122 = arith.addf %120, %121 : vector<8x128xf32>
    %123 = vector.shape_cast %122 : vector<8x128xf32> to vector<1x8x128xf32>
    %c0_60 = arith.constant 0 : index
    %c0_61 = arith.constant 0 : index
    %c0_62 = arith.constant 0 : index
    %124 = vector.load %arg16[%c0_60, %c0_61, %c0_62] : memref<1x8x128xf32, #tpu.memory_space<vmem>>, vector<1x8x128xf32>
    tpu.vector_store %arg16[%c0_60, %c0_61, %c0_62], %123 {strides = array<i32>} : memref<1x8x128xf32, #tpu.memory_space<vmem>>, vector<1x8x128xf32>,
    return
  }
  func.func @transform_0(%arg0: i32, %arg1: i32) -> (i32, i32, i32) {
    %c0_i32 = arith.constant 0 : i32
    %c0_i32_0 = arith.constant 0 : i32
    %c0_i32_1 = arith.constant 0 : i32
    return %arg0, %c0_i32, %c0_i32_0 : i32, i32, i32
  }
  func.func @transform_1(%arg0: i32, %arg1: i32) -> (i32, i32, i32) {
    %c0_i32 = arith.constant 0 : i32
    %c0_i32_0 = arith.constant 0 : i32
    %c0_i32_1 = arith.constant 0 : i32
    return %arg0, %c0_i32, %c0_i32_0 : i32, i32, i32
  }
  func.func @transform_2(%arg0: i32, %arg1: i32) -> (i32, i32, i32) {
    %c0_i32 = arith.constant 0 : i32
    %c0_i32_0 = arith.constant 0 : i32
    %c0_i32_1 = arith.constant 0 : i32
    return %arg1, %c0_i32, %c0_i32_0 : i32, i32, i32
  }
  func.func @transform_3(%arg0: i32, %arg1: i32) -> (i32, i32, i32) {
    %c0_i32 = arith.constant 0 : i32
    %c0_i32_0 = arith.constant 0 : i32
    %c0_i32_1 = arith.constant 0 : i32
    return %arg1, %c0_i32, %c0_i32_0 : i32, i32, i32
  }
  func.func @transform_4(%arg0: i32, %arg1: i32) -> (i32, i32, i32) {
    %c0_i32 = arith.constant 0 : i32
    %c0_i32_0 = arith.constant 0 : i32
    %c0_i32_1 = arith.constant 0 : i32
    return %arg1, %c0_i32, %c0_i32_0 : i32, i32, i32
  }
  func.func @transform_5(%arg0: i32, %arg1: i32) -> (i32, i32, i32) {
    %c0_i32 = arith.constant 0 : i32
    %c0_i32_0 = arith.constant 0 : i32
    %c0_i32_1 = arith.constant 0 : i32
    return %arg1, %c0_i32, %c0_i32_0 : i32, i32, i32
  }
  func.func @transform_6(%arg0: i32, %arg1: i32) -> (i32, i32, i32) {
    %c0_i32 = arith.constant 0 : i32
    %c0_i32_0 = arith.constant 0 : i32
    %c0_i32_1 = arith.constant 0 : i32
    return %arg1, %c0_i32, %c0_i32_0 : i32, i32, i32
  }
  func.func @transform_7(%arg0: i32, %arg1: i32) -> (i32, i32, i32) {
    %c0_i32 = arith.constant 0 : i32
    %c0_i32_0 = arith.constant 0 : i32
    %c0_i32_1 = arith.constant 0 : i32
    return %arg1, %c0_i32, %c0_i32_0 : i32, i32, i32
  }
  func.func @transform_8(%arg0: i32, %arg1: i32) -> (i32, i32, i32) {
    %c0_i32 = arith.constant 0 : i32
    %c0_i32_0 = arith.constant 0 : i32
    %c0_i32_1 = arith.constant 0 : i32
    return %arg1, %c0_i32, %c0_i32_0 : i32, i32, i32
  }
  func.func @transform_9(%arg0: i32, %arg1: i32) -> (i32, i32, i32) {
    %c0_i32 = arith.constant 0 : i32
    %c0_i32_0 = arith.constant 0 : i32
    %c0_i32_1 = arith.constant 0 : i32
    return %arg1, %c0_i32, %c0_i32_0 : i32, i32, i32
  }
  func.func @transform_10(%arg0: i32, %arg1: i32) -> (i32, i32, i32) {
    %c0_i32 = arith.constant 0 : i32
    %c0_i32_0 = arith.constant 0 : i32
    %c0_i32_1 = arith.constant 0 : i32
    return %arg1, %c0_i32, %c0_i32_0 : i32, i32, i32
  }
  func.func @transform_11(%arg0: i32, %arg1: i32) -> (i32, i32, i32) {
    %c0_i32 = arith.constant 0 : i32
    %c0_i32_0 = arith.constant 0 : i32
    %c0_i32_1 = arith.constant 0 : i32
    return %arg1, %c0_i32, %c0_i32_0 : i32, i32, i32
  }
  func.func @transform_12(%arg0: i32, %arg1: i32) -> (i32, i32, i32) {
    %c0_i32 = arith.constant 0 : i32
    %c0_i32_0 = arith.constant 0 : i32
    %c0_i32_1 = arith.constant 0 : i32
    return %arg1, %c0_i32, %c0_i32_0 : i32, i32, i32
  }
  func.func @transform_13(%arg0: i32, %arg1: i32) -> (i32, i32, i32) {
    %c0_i32 = arith.constant 0 : i32
    %c0_i32_0 = arith.constant 0 : i32
    %c0_i32_1 = arith.constant 0 : i32
    return %arg1, %c0_i32, %c0_i32_0 : i32, i32, i32
  }
  func.func @transform_14(%arg0: i32, %arg1: i32) -> (i32, i32, i32) {
    %c0_i32 = arith.constant 0 : i32
    %c0_i32_0 = arith.constant 0 : i32
    %c0_i32_1 = arith.constant 0 : i32
    return %arg0, %c0_i32, %c0_i32_0 : i32, i32, i32
  }
}

</mosaic_0001>

<bundles_post_ra>
// kernel: tpu_custom_call.1
= control target key start
LH: loop header
LB: loop body
LE: loop exit
PB: predicated region body
PF: predicated region fallthrough
CT: control target
= control target key end

     0   :  { %s4593_s0 = inlined_call_operand.hbm [shape: f32[2,8,128], index: 0, kind: input, shape index: {}]   ;;  %s4594_s1 = inlined_call_operand.hbm [shape: f32[2,1,8], index: 1, kind: input, shape index: {}]   ;;  %s4595_s2 = inlined_call_operand.hbm [shape: bf16[2,128,384], index: 2, kind: input, shape index: {}]   ;;  %s4596_s3 = inlined_call_operand.hbm [shape: f32[2,1,384], index: 3, kind: input, shape index: {}]   ;;  %s4597_s4 = inlined_call_operand.hbm [shape: bf16[2,128,128], index: 4, kind: input, shape index: {}]   ;;  %s4598_s5 = inlined_call_operand.vmem [shape: f32[2,1,128], index: 5, kind: input, shape index: {}]   ;;  %s4599_s6 = inlined_call_operand.vmem [shape: f32[2,1,128], index: 6, kind: input, shape index: {}]   ;;  %s4600_s7 = inlined_call_operand.vmem [shape: f32[2,1,128], index: 7, kind: input, shape index: {}]   ;;  %s4601_s8 = inlined_call_operand.hbm [shape: bf16[2,128,256], index: 8, kind: input, shape index: {}]   ;;  %s4602_s9 = inlined_call_operand.vmem [shape: f32[2,1,256], index: 9, kind: input, shape index: {}]   ;;  %s4603_s10 = inlined_call_operand.hbm [shape: bf16[2,256,128], index: 10, kind: input, shape index: {}]   ;;  %s4604_s11 = inlined_call_operand.vmem [shape: f32[2,1,128], index: 11, kind: input, shape index: {}]   ;;  %s4605_s12 = inlined_call_operand.vmem [shape: f32[2,1,128], index: 12, kind: input, shape index: {}]   ;;  %s4606_s13 = inlined_call_operand.vmem [shape: f32[2,1,128], index: 13, kind: input, shape index: {}]   ;;  %s4607_s14 = inlined_call_operand.hbm [shape: f32[2,8,128], index: 14, kind: output, shape index: {}]  }
   0x1   :  { %4634 = sst [smem:[#allocation40_spill]] %s4593_s0 }
   0x2   :  { %4635 = sst [smem:[#allocation41_spill]] %s4594_s1 }
   0x3   :  { %4636 = sst [smem:[#allocation42_spill]] %s4595_s2 }
   0x4   :  { %4637 = sst [smem:[#allocation43_spill]] %s4596_s3 }
   0x5   :  { %4638 = sst [smem:[#allocation44_spill]] %s4597_s4 }
   0x6   :  { %4639 = sst [smem:[#allocation45_spill]] %s4598_s5 }
   0x7   :  { %4640 = sst [smem:[#allocation46_spill]] %s4599_s6 }
   0x8   :  { %4641 = sst [smem:[#allocation47_spill]] %s4600_s7 }
   0x9   :  { %4642 = sst [smem:[#allocation48_spill]] %s4601_s8 }
   0xa   :  { %4643 = sst [smem:[#allocation49_spill]] %s4602_s9 }
   0xb   :  { %4644 = sst [smem:[#allocation50_spill]] %s4603_s10 }
   0xc   :  { %4645 = sst [smem:[#allocation51_spill]] %s4604_s11 }
   0xd   :  { %4646 = sst [smem:[#allocation52_spill]] %s4605_s12 }
   0xe   :  { %4647 = sst [smem:[#allocation53_spill]] %s4606_s13 }
   0xf   :  { %4648 = sst [smem:[#allocation54_spill]] %s4607_s14 }
  0x10   :  { %19 = vsyncpa [#allocation3], 0 }
  0x11   :  { %21 = vsyncpa [#allocation3 + $0x1], 0 }
  0x12   :  { %22 = vsyncpa [#allocation6], 0 }
  0x13   :  { %24 = vsyncpa [#allocation6 + $0x1], 0 }
  0x14   :  { %25 = vsyncpa [#allocation9], 0 }
  0x15   :  { %27 = vsyncpa [#allocation9 + $0x1], 0 }
  0x16   :  { %28 = vsyncpa [#allocation12], 0 }
  0x17   :  { %30 = vsyncpa [#allocation12 + $0x1], 0 }
  0x18   :  { %31 = vsyncpa [#allocation4], 0 }
  0x19   :  { %33 = vsyncpa [#allocation4 + $0x1], 0  ;;  %s3899_s29 = smov 0   ;;  %s3901_s30 = smov 0  }
  0x1a   :  { %s3903_s15 = smov 0   ;;  %s3905_s16 = smov 0  }
  0x1b   :  { %s3907_s17 = smov 0   ;;  %s3909_s18 = smov 0  }
  0x1c   :  { %s3911_s19 = smov 0   ;;  %s3913_s20 = smov 0  }
  0x1d   :  { %s3915_s21 = smov 0   ;;  %s3917_s22 = smov 0  }
  0x1e   :  { %s3919_s23 = smov 0  }
  0x1f LB: > { %4649 = sst [smem:[#allocation21_spill]] %s3764_s30  ;;  %s3953_s24 = sadd.s32 4294967295, %s3800_s23   ;;  %s3800_s23 = sphi %s3919_s23, %s39_s23   ;;  %s3796_s22 = sphi %s3917_s22, %s4736_s22   ;;  %s3792_s21 = sphi %s3915_s21, %s4738_s21   ;;  %s3788_s20 = sphi %s3913_s20, %s4734_s20   ;;  %s3784_s19 = sphi %s3911_s19, %s4737_s19   ;;  %s3780_s18 = sphi %s3909_s18, %s4733_s18   ;;  %s3776_s17 = sphi %s3907_s17, %s4732_s17   ;;  %s3772_s16 = sphi %s3905_s16, %s4731_s16   ;;  %s3768_s15 = sphi %s3903_s15, %s4730_s15   ;;  %s3764_s30 = sphi %s3901_s30, %s4729_s30   ;;  %s3760_s29 = sphi %s3899_s29, %s4728_s29  }
  0x20   : > { %4650 = sst [smem:[#allocation22_spill]] %s3768_s15  ;;  %s2959_s25 = sadd.s32 4294967294, %s3800_s23  }
  0x21   : > { %4651 = sst [smem:[#allocation23_spill]] %s3772_s16  ;;  %p65_p0 = scmp.ne.s32.totalorder %s3780_s18, %s3776_s17 }
  0x22   : > { %4652 = sst [smem:[#allocation24_spill]] %s3776_s17  ;;  %p66_p1 = scmp.eq.s32.totalorder %s3800_s23, 0 }
  0x23   : > { %4653 = sst [smem:[#allocation25_spill]] %s3780_s18  ;;  %p71_p2 = scmp.ne.s32.totalorder %s3776_s17, %s3772_s16 }
  0x24   : > { %4654 = sst [smem:[#allocation26_spill]] %s3784_s19  ;;  %p72_p3 = scmp.eq.s32.totalorder %s3953_s24, 0 }
  0x25   : > { %4655 = sst [smem:[#allocation27_spill]] %s3788_s20  ;;  %p3967_p4 = por %p66_p1, %p65_p0 }
  0x26   : > { %4656 = sst [smem:[#allocation28_spill]] %s3796_s22  ;;  %p3972_p5 = por %p72_p3, %p71_p2 }
  0x27   : > { %4657 = sst [smem:[#allocation29_spill]] %s3800_s23  ;;  %p117_p6 = scmp.ne.s32.totalorder %s3768_s15, %s3764_s30 }
  0x28   : > { %4658 = sst [smem:[#allocation30_spill]] %s3953_s24  ;;  %p123_p7 = scmp.ne.s32.totalorder %s3764_s30, %s3760_s29 }
  0x29   : > { %s4660_s20 = scalar_select %p3972_p5, 1, 0 }
  0x2a   : > { %p433_p8 = scmp.eq.s32.totalorder %s3953_s24, 3  ;;  %p3980_p9 = por %p117_p6, %p66_p1 }
  0x2b   : > { %4661 = sst [smem:[#allocation31_spill]] %s4660_s20  ;;  %p439_p10 = scmp.eq.s32.totalorder %s2959_s25, 3 }
  0x2c   : > { %p3984_p11 = por %p123_p7, %p72_p3  ;;  %p3991_p12 = por %p433_p8, %p65_p0 }
  0x2d   : > { %p3995_p13 = por %p439_p10, %p71_p2  ;;  %p3264_p5 = scmp.lt.s32.totalorder %s3800_s23, 4 }
  0x2e   : > { %s4663_s26 = scalar_select %p3984_p11, 1, 0 }
  0x2f   : > { %s4665_s14 = scalar_select %p3991_p12, 1, 0 }
  0x30   : > { %4664 = sst [smem:[#allocation32_spill]] %s4663_s26  ;;  %s4001_s29 = sand.u32 1, %s3780_s18  }
  0x31   : > { %4666 = sst [smem:[#allocation33_spill]] %s4665_s14  ;;  %s4004_s13 = sand.u32 1, %s3800_s23  }
  0x32   : > { %s4667_s16 = scalar_select %p3995_p13, 1, 0 }
  0x33   : > { %p4008_p1 = pnand %p3264_p5, %p3967_p4  ;;  %s2964_s12 = sshll.u32 %s3796_s22, 4 }
  0x34   : > { %4668 = sst [smem:[#allocation34_spill]] %s4667_s16  ;;  %s480_s14 = scalar_lea.vmem [#allocation5], %s4001_s29 }
  0x35   : > { %s487_s11 = sshll.u32 %s480_s14, 4  ;;  %s4670_s1 = sld [smem:[#allocation41_spill]]  ;;  %s488_s11 = int_to_ptr.vmem [resolvable:$true] %s487_s11 }
  0x36   : > { %p4019_p0 = pnand %p3264_p5, %p3980_p9  ;;  %s4615_s28 = scalar_lea.sflag [#allocation6], %s4004_s13 }
  0x37   : > { %p4624_p2 = pneg %p4008_p1  ;;  %s3481_s5 = scalar_lea.vmem %s488_s11, 16 }
  0x38   : > { %p3482_p3 = scmp.ne.s32.totalorder %s488_s11, %s3481_s5  ;;  %s3802_s14 = smov [#allocation5]  }
  0x39   : > { %s3486_s19 = sshll.u32 %s3802_s14, 4  ;;  %s3487_s19 = int_to_ptr.vmem [resolvable:$false] %s3486_s19 }
  0x3a   : > { %p3484_p4 = pnand %p3482_p3, %p4624_p2  ;;  %s3488_s7 = scalar_lea.vmem %s3487_s19, 32 }
  0x3b   : > { %s485_s16 = scalar_lea.hbm %s4670_s1, %s2964_s12  ;;  %p3489_p7 = scmp.lt.s32.totalorder %s488_s11, %s3487_s19 }
  0x3c   : > { %p3485_p6 = pneg %p3484_p4  ;;  %p3490_p8 = scmp.lt.s32.totalorder %s3488_s7, %s3481_s5 }
  0x3e   : > { %p3491_p10 = por %p3490_p8, %p3489_p7 }
  0x40   : > { %p3492_p5 = pnand %p3491_p10, %p3485_p6 }
  0x42   : > { %3495 = shalt.err (!%p3492_p5)
}
  0x43   : > { %3244 = dma.hbm_to_vmem [thread:$0]  (!%p4008_p1), %s485_s16, 16, %s488_s11, %s4615_s28  }
  0x44   : > { %p2976_p9 = scmp.ge.s32.totalorder %s3800_s23, 1  ;;  %p638_p3 = scmp.lt.s32.totalorder %s3800_s23, 5 }
  0x45   : > { %s4036_s9 = sand.u32 1, %s3768_s15   ;;  %s48_s12 = sadd.s32 1, %s3792_s21 }
  0x46   : > { %p4038_p4 = pnand %p2976_p9, %p638_p3  ;;  %p49_p6 = scmp.ge.s32.totalorder %s48_s12, 2 }
  0x47   : > { %s3218_s27 = smul.u32 3, %s4036_s9  ;;  %s4675_s16 = sadd.s32 1, %s3796_s22 }
  0x48   : > { %s4672_s5 = scalar_select %p4038_p4, 1, 0 }
  0x49   : > { %s4740_s12 = smov (%p49_p6, %s48_s12), 0  ;;  %s4742_s16 = smov (!%p49_p6, %s4675_s16), %s3796_s22 }
  0x4a   : > { %4673 = sst [smem:[#allocation35_spill]] %s4672_s5  ;;  %s107_s14 = ssub.s32 %s3792_s21, %s4740_s12 }
  0x4b   : > { %4674 = sst [smem:[#allocation36_spill]] %s4740_s12  ;;  %p53_p7 = scmp.ge.s32.totalorder %s4742_s16, 2 }
  0x4c   : > { %p108_p8 = scmp.eq.s32.totalorder %s107_s14, 0  ;;  %s3219_s7 = smul.u32 48, %s3792_s21 }
  0x4d   : > { %s519_s28 = scalar_lea.vmem [#allocation8], %s3218_s27  ;;  %s4744_s16 = smov (%p53_p7, %s4742_s16), 0 }
  0x4e   : > { %s527_s1 = sshll.u32 %s519_s28, 4  ;;  %4676 = sst [smem:[#allocation37_spill]] %s4744_s16  ;;  %s528_s1 = int_to_ptr.vmem [resolvable:$true] %s527_s1 }
  0x4f   : > { %s4677_s23 = sadd.s32 1, %s3768_s15  ;;  %s55_s26 = ssub.s32 %s3796_s22, %s4744_s16 }
  0x50   : > { %s4059_s19 = scalar_select %p108_p8, %s3768_s15, %s4677_s23  }
  0x51   : > { %s4679_s3 = sld [smem:[#allocation43_spill]]  ;;  %p4066_p10 = scmp.eq.s32.totalorder %s55_s26, 0 }
  0x52   : > { %4678 = sst [smem:[#allocation38_spill]] %s4059_s19  ;;  %s4628_s14 = scalar_lea.sflag [#allocation9], %s4004_s13 }
  0x53   : > { %p4073_p5 = pneg %p4019_p0  ;;  %s3509_s27 = scalar_lea.vmem %s528_s1, 48 }
  0x54   : > { %p3510_p9 = scmp.ne.s32.totalorder %s528_s1, %s3509_s27  ;;  %s3803_s23 = smov [#allocation8]  }
  0x55   : > { %s3514_s30 = sshll.u32 %s3803_s23, 4  ;;  %s3515_s30 = int_to_ptr.vmem [resolvable:$false] %s3514_s30 }
  0x56   : > { %p3512_p3 = pnand %p3510_p9, %p4073_p5  ;;  %s3516_s26 = scalar_lea.vmem %s3515_s30, 96 }
  0x57   : > { %s525_s24 = scalar_lea.hbm %s4679_s3, %s3219_s7  ;;  %p3517_p7 = scmp.lt.s32.totalorder %s528_s1, %s3515_s30 }
  0x58   : > { %p3513_p6 = pneg %p3512_p3  ;;  %p3518_p8 = scmp.lt.s32.totalorder %s3516_s26, %s3509_s27 }
  0x5a   : > { %p3519_p2 = por %p3518_p8, %p3517_p7 }
  0x5c   : > { %p3520_p13 = pnand %p3519_p2, %p3513_p6 }
  0x5e   : > { %3523 = shalt.err (!%p3520_p13)
}
  0x5f   : > { %3250 = dma.hbm_to_vmem [thread:$0]  (!%p4019_p0), %s525_s24, 48, %s528_s1, %s4628_s14  }
  0x60   : > { %s4682_s11 = sadd.s32 1, %s3780_s18  ;;  %s3070_s27 = sshll.u32 %s3792_s21, 11 }
  0x61   : > { %s4088_s7 = scalar_select %p4066_p10, %s3780_s18, %s4682_s11  }
  0x62   : > { %s4684_s8 = sld [smem:[#allocation48_spill]]  ;;  %s4685_s3 = sshll.u32 %s4036_s9, 7 }
  0x63   : > { %4683 = sst [smem:[#allocation39_spill]] %s4088_s7  ;;  %s577_s16 = scalar_lea.vmem [#allocation11], %s4685_s3 }
  0x64   : > { %s584_s12 = sshll.u32 %s577_s16, 4  ;;  %s574_s19 = scalar_lea.sflag [#allocation12], %s4004_s13  ;;  %s585_s12 = int_to_ptr.vmem [resolvable:$true] %s584_s12 }
  0x65   : > { %s3537_s15 = scalar_lea.vmem %s585_s12, 2048  ;;  %s3804_s1 = smov [#allocation11]  }
  0x66   : > { %p3538_p13 = scmp.ne.s32.totalorder %s585_s12, %s3537_s15  ;;  %s3542_s24 = sshll.u32 %s3804_s1, 4  ;;  %s3543_s24 = int_to_ptr.vmem [resolvable:$false] %s3542_s24 }
  0x67   : > { %s3544_s20 = scalar_lea.vmem %s3543_s24, 4096  ;;  %p3545_p10 = scmp.lt.s32.totalorder %s585_s12, %s3543_s24 }
  0x68   : > { %s583_s26 = scalar_lea.hbm %s4684_s8, %s3070_s27  ;;  %p3540_p2 = pnand %p3538_p13, %p4073_p5 }
  0x69   : > { %p3546_p3 = scmp.lt.s32.totalorder %s3544_s20, %s3537_s15 }
  0x6a   : > { %p3541_p9 = pneg %p3540_p2 }
  0x6b   : > { %p3547_p6 = por %p3546_p3, %p3545_p10 }
  0x6d   : > { %p3548_p7 = pnand %p3547_p6, %p3541_p9 }
  0x6f   : > { %3551 = shalt.err (!%p3548_p7)
}
  0x70   : > { %s3805_s11 = smov 128   ;;  %s3806_s3 = smov 8  }
  0x71   : > { %3256 = dma.hbm_to_vmem [thread:$0]  (!%p4019_p0), %s583_s26, 2048, %s585_s12, %s574_s19, %s3805_s11, %s3805_s11, %s3806_s3  }
  0x72   : > { %s4686_s10 = sld [smem:[#allocation50_spill]]  ;;  %s4687_s30 = sshll.u32 %s4036_s9, 7 }
  0x73   : > { %s605_s1 = scalar_lea.vmem [#allocation13], %s4687_s30  ;;  %s2962_s20 = sshll.u32 %s4001_s29, 3 }
  0x74   : > { %s612_s24 = sshll.u32 %s605_s1, 4  ;;  %s2963_s14 = sshll.u32 %s3796_s22, 7  ;;  %s4110_s24 = int_to_ptr.vmem [resolvable:$true] %s612_s24 }
  0x75   : > { %s4688_s0 = sld [smem:[#allocation40_spill]]  ;;  %s463_s17 = scalar_lea.vmem [#allocation2], %s2962_s20 }
  0x76   : > { %s470_s5 = sshll.u32 %s463_s17, 4  ;;  %s3217_s12 = smul.u32 3072, %s3792_s21  ;;  %s471_s5 = int_to_ptr.vmem [resolvable:$true] %s470_s5 }
  0x77   : > { %s460_s26 = scalar_lea.sflag [#allocation3], %s4001_s29  ;;  %s3565_s11 = scalar_lea.vmem %s471_s5, 128 }
  0x78   : > { %s4106_s15 = scalar_lea.hbm %s4686_s10, %s3070_s27  ;;  %p3566_p8 = scmp.ne.s32.totalorder %s471_s5, %s3565_s11 }
  0x79   : > { %p4689_p13 = pneg %p4008_p1  ;;  %s3807_s27 = smov [#allocation2]  }
  0x7a   : > { %s3570_s3 = sshll.u32 %s3807_s27, 4  ;;  %s3571_s3 = int_to_ptr.vmem [resolvable:$false] %s3570_s3 }
  0x7b   : > { %s468_s18 = scalar_lea.hbm %s4688_s0, %s2963_s14  ;;  %p3568_p2 = pnand %p3566_p8, %p4689_p13 }
  0x7c   : > { %s3572_s16 = scalar_lea.vmem %s3571_s3, 256  ;;  %p3573_p10 = scmp.lt.s32.totalorder %s471_s5, %s3571_s3 }
  0x7d   : > { %p3569_p9 = pneg %p3568_p2  ;;  %p3574_p3 = scmp.lt.s32.totalorder %s3572_s16, %s3565_s11 }
  0x7f   : > { %p3575_p6 = por %p3574_p3, %p3573_p10 }
  0x81   : > { %p3576_p7 = pnand %p3575_p6, %p3569_p9 }
  0x83   : > { %3579 = shalt.err (!%p3576_p7)
}
  0x84   : > { %3241 = dma.hbm_to_vmem [thread:$0]  (!%p4008_p1), %s468_s18, 128, %s471_s5, %s460_s26  }
  0x85   : > { %s4690_s2 = sld [smem:[#allocation42_spill]]  ;;  %s4691_s14 = smul.u32 192, %s4036_s9 }
  0x86   : > { %s2967_s30 = sshll.u32 %s4036_s9, 6  ;;  %s3808_s20 = smov [#allocation7]  }
  0x87   : > { %s498_s7 = scalar_lea.vmem [#allocation7], %s4691_s14  ;;  %s3598_s25 = sshll.u32 %s3808_s20, 4  ;;  %s3599_s25 = int_to_ptr.vmem [resolvable:$false] %s3598_s25 }
  0x88   : > { %s505_s23 = sshll.u32 %s498_s7, 4  ;;  %s3600_s11 = scalar_lea.vmem %s3599_s25, 6144  ;;  %s506_s23 = int_to_ptr.vmem [resolvable:$true] %s505_s23 }
  0x89   : > { %s3593_s1 = scalar_lea.vmem %s506_s23, 3072  ;;  %p3601_p9 = scmp.lt.s32.totalorder %s506_s23, %s3599_s25 }
  0x8a   : > { %p3594_p8 = scmp.ne.s32.totalorder %s506_s23, %s3593_s1  ;;  %p3602_p1 = scmp.lt.s32.totalorder %s3600_s11, %s3593_s1 }
  0x8b   : > { %s504_s29 = scalar_lea.hbm %s4690_s2, %s3217_s12 }
  0x8c   : > { %p3596_p13 = pnand %p3594_p8, %p4073_p5  ;;  %p3603_p10 = por %p3602_p1, %p3601_p9 }
  0x8e   : > { %p3597_p2 = pneg %p3596_p13 }
  0x90   : > { %p3604_p3 = pnand %p3603_p10, %p3597_p2 }
  0x92   : > { %3607 = shalt.err (!%p3604_p3)
}
  0x93   : > { %s3809_s18 = smov 192   ;;  %s3810_s9 = smov 12  }
  0x94   : > { %s4692_s5 = scalar_lea.sflag [#allocation6], %s4004_s13  ;;  %s3069_s12 = sshll.u32 %s3792_s21, 10 }
  0x95   : > { %3247 = dma.hbm_to_vmem [thread:$0]  (!%p4019_p0), %s504_s29, 3072, %s506_s23, %s4692_s5, %s3809_s18, %s3809_s18, %s3810_s9  }
  0x96   : > { %s4693_s4 = sld [smem:[#allocation44_spill]]  ;;  %s538_s16 = scalar_lea.vmem [#allocation10], %s2967_s30 }
  0x97   : > { %s545_s8 = sshll.u32 %s538_s16, 4  ;;  %s3811_s14 = smov [#allocation10]   ;;  %s546_s8 = int_to_ptr.vmem [resolvable:$true] %s545_s8 }
  0x98   : > { %s3621_s17 = scalar_lea.vmem %s546_s8, 1024  ;;  %s3626_s7 = sshll.u32 %s3811_s14, 4  ;;  %s3627_s7 = int_to_ptr.vmem [resolvable:$false] %s3626_s7 }
  0x99   : > { %p3622_p6 = scmp.ne.s32.totalorder %s546_s8, %s3621_s17  ;;  %s3628_s1 = scalar_lea.vmem %s3627_s7, 2048 }
  0x9a   : > { %p3629_p13 = scmp.lt.s32.totalorder %s546_s8, %s3627_s7  ;;  %p3630_p2 = scmp.lt.s32.totalorder %s3628_s1, %s3621_s17 }
  0x9b   : > { %p3624_p7 = pnand %p3622_p6, %p4073_p5 }
  0x9c   : > { %s544_s3 = scalar_lea.hbm %s4693_s4, %s3069_s12  ;;  %p3631_p9 = por %p3630_p2, %p3629_p13 }
  0x9d   : > { %p3625_p8 = pneg %p3624_p7 }
  0x9f   : > { %p3632_p1 = pnand %p3631_p9, %p3625_p8 }
  0xa1   : > { %3635 = shalt.err (!%p3632_p1)
}
  0xa2   : > { %s3812_s29 = smov 64   ;;  %s3813_s23 = smov 4  }
  0xa3   : > { %s4694_s30 = scalar_lea.sflag [#allocation9], %s4004_s13  ;;  %s3649_s20 = scalar_lea.vmem %s4110_s24, 2048 }
  0xa4   : > { %3253 = dma.hbm_to_vmem [thread:$0]  (!%p4019_p0), %s544_s3, 1024, %s546_s8, %s4694_s30, %s3812_s29, %s3812_s29, %s3813_s23  }
  0xa5   : > { %p3650_p10 = scmp.ne.s32.totalorder %s4110_s24, %s3649_s20  ;;  %s3814_s25 = smov [#allocation13]  }
  0xa6   : > { %s3654_s11 = sshll.u32 %s3814_s25, 4  ;;  %s3655_s11 = int_to_ptr.vmem [resolvable:$false] %s3654_s11 }
  0xa7   : > { %p3652_p3 = pnand %p3650_p10, %p4073_p5  ;;  %s3656_s18 = scalar_lea.vmem %s3655_s11, 4096 }
  0xa8   : > { %p3657_p7 = scmp.lt.s32.totalorder %s4110_s24, %s3655_s11  ;;  %p3658_p8 = scmp.lt.s32.totalorder %s3656_s18, %s3649_s20 }
  0xa9   : > { %p3653_p6 = pneg %p3652_p3 }
  0xaa   : > { %p3659_p13 = por %p3658_p8, %p3657_p7 }
  0xac   : > { %p3660_p2 = pnand %p3659_p13, %p3653_p6 }
  0xae   : > { %3663 = shalt.err (!%p3660_p2)
}
  0xaf   : > { %3259 = dma.hbm_to_vmem [thread:$0]  (!%p4019_p0), %s4106_s15, 2048, %s4110_s24, %s574_s19, %s3812_s29, %s3812_s29, %s3813_s23  }
  0xb0   : > { %642 = sbr.rel (%p4038_p4) target bundleno = 2591 (0xa1f), region = 76  ;;  %s4696_s28 = sld [smem:[#allocation24_spill]] (!%p4038_p4) }
  0xb1   : > { %s4697_s5 = sld [smem:[#allocation31_spill]] (!%p4038_p4) }
  0xb6   : > { %s4160_s12 = sand.u32 1, %s4696_s28  }
  0xb7   : > { %s4632_s26 = sshll.u32 %s4160_s12, 3  ;;  %s645_s27 = scalar_lea.sflag [#allocation3], %s4160_s12 }
  0xb8   : > { %s4166_s3 = scalar_lea.vmem [#allocation2], %s4632_s26  ;;  %p4698_p5 = scmp.ne.s32.totalorder %s4697_s5, 0 }
  0xba   : > { %3735 = dma.done.wait (%p4698_p5), %s645_s27, 128  }
  0xbb   : > { %3737 = vsyncadd (%p4698_p5), %s645_s27, 4294967168  ;;  %s4699_s6 = sld [smem:[#allocation30_spill]] }
  0xc1   : > { %s653_s13 = sand.u32 1, %s4699_s6  }
  0xc2   : > { %s654_s19 = scalar_lea.sflag [#allocation6], %s653_s13 }
  0xc3   : > { %3739 = dma.done.wait (%p4698_p5), %s654_s19, 16  }
  0xc4   : > { %3741 = vsyncadd (%p4698_p5), %s654_s19, 4294967280  ;;  %s4700_s24 = sld [smem:[#allocation21_spill]] }
  0xca   : > { %s663_s8 = sand.u32 1, %s4700_s24  }
  0xcb   : > { %s3220_s17 = smul.u32 192, %s663_s8 }
  0xcd   : > { %s4179_s14 = scalar_lea.vmem [#allocation7], %s3220_s17 }
  0xce   : > { %3743 = dma.done.wait (%p3984_p11), %s654_s19, 3072  }
  0xcf   : > { %3745 = vsyncadd (%p3984_p11), %s654_s19, 4294964224  ;;  %s3221_s7 = smul.u32 3, %s663_s8  ;;  %s671_s1 = scalar_lea.sflag [#allocation9], %s653_s13 }
  0xd1   : > { %s4185_s29 = scalar_lea.vmem [#allocation8], %s3221_s7 }
  0xd2   : > { %3747 = dma.done.wait (%p3984_p11), %s671_s1, 1072  }
  0xd3   : > { %3749 = vsyncadd (%p3984_p11), %s671_s1, 4294966224  ;;  %s2978_s23 = sshll.u32 %s663_s8, 6  ;;  %s2979_s30 = sshll.u32 %s663_s8, 7 }
  0xd4   : > { %s4191_s20 = scalar_lea.vmem [#allocation10], %s2978_s23  ;;  %s689_s25 = scalar_lea.sflag [#allocation12], %s653_s13 }
  0xd5   : > { %s4193_s11 = scalar_lea.vmem [#allocation11], %s2979_s30 }
  0xd6   : > { %3751 = dma.done.wait (%p3984_p11), %s689_s25, 4096  }
  0xd7   : > { %3753 = vsyncadd (%p3984_p11), %s689_s25, 4294963200  ;;  %s4702_s18 = sld [smem:[#allocation26_spill]]  ;;  %s4233_s8 = scalar_lea.vmem [#allocation13], %s2979_s30 }
  0xd8   : > { %s4705_s7 = sld [smem:[#allocation47_spill]]  ;;  %s4710_s17 = sshll.u32 %s4160_s12, 3 }
  0xd9   : > { %s4706_s26 = sld [smem:[#allocation49_spill]] }
  0xda   : > { %s4707_s2 = sld [smem:[#allocation51_spill]] }
  0xdb   : > { %s4708_s6 = sld [smem:[#allocation52_spill]] }
  0xdc   : > { %s4709_s24 = sld [smem:[#allocation53_spill]] }
  0xdd   : > { %p797_p0 = scmp.lt.s32.totalorder %s4702_s18, 1  ;;  %p2983_p11 = scmp.ne.s32.totalorder %s4702_s18, 0 }
  0xdf   : > { %s4201_s9 = scalar_select %p797_p0, %s4702_s18, 1 }
  0xe0   : > { %823 = sbr.rel (%p2983_p11) target bundleno = 231 (0xe7), region = 108 }
  0xe1   : > { %s805_s1 = scalar_lea.vmem %s4705_s7, %s4201_s9  ;;  %s2982_s23 = sshll.u32 %s4201_s9, 1 }
  0xe2   : > { %s4219_s28 = scalar_lea.vmem %s4706_s26, %s2982_s23  ;;  %s812_s4 = scalar_lea.vmem %s4707_s2, %s4201_s9 }
  0xe3   : > { %s815_s22 = scalar_lea.vmem %s4708_s6, %s4201_s9  ;;  %s818_s16 = scalar_lea.vmem %s4709_s24, %s4201_s9 }
  0xe4   : > { %s4237_s7 = scalar_lea.vmem [#allocation14], %s4710_s17 }
  0xe5   : > { %v824_v0 = vld [vmem:[%s4166_s3] sm:$0xff] }
  0xe6   : > { %825 = vst [vmem:[%s4237_s7] sm:$0xff] %v824_v0 }
  0xe7 PF: > { %v3368_v1 = vld [vmem:[%s4179_s14 + $0xac] ss:$12 sps:$4 sm:$0xff]   ;;  %v3370_v2 = vld [vmem:[%s4179_s14 + $0xa8] ss:$12 sps:$4 sm:$0xff]   ;;  %v3815_v3 = vmov 0   ;;  %v3816_v21 = vmov 0.0   ;;  %v862_v29 = vlaneseq }
  0xe8   : > { %1037 = vmatprep.mubr.bf16.mxu0 %v3815_v3  ;;  %1005 = vmatprep.subr.bf16.mxu0 %v3368_v1  ;;  %v3371_v4 = vld [vmem:[%s4179_s14 + $0x94] ss:$12 sps:$4 sm:$0xff]   ;;  %v3373_v5 = vld [vmem:[%s4179_s14 + $0x90] ss:$12 sps:$4 sm:$0xff]   ;;  %v3376_v7 = vld [vmem:[%s4179_s14 + $0x78] ss:$12 sps:$4 sm:$0xff]  }
  0xe9   : > { %1006 = vmatpush1.bf16.msra.mxu0 %v3370_v2  ;;  %v3374_v6 = vld [vmem:[%s4179_s14 + $0x7c] ss:$12 sps:$4 sm:$0xff]   ;;  %v3377_v8 = vld [vmem:[%s4179_s14 + $0x64] ss:$12 sps:$4 sm:$0xff]   ;;  %v3379_v9 = vld [vmem:[%s4179_s14 + $0x60] ss:$12 sps:$4 sm:$0xff]   ;;  %3128 = vmatprep.subr.bf16.mxu1 %v3816_v21 }
  0xea   : > { %1007 = vmatprep.subr.bf16.mxu0 %v3371_v4  ;;  %v3380_v10 = vld [vmem:[%s4179_s14 + $0x4c] ss:$12 sps:$4 sm:$0xff]   ;;  %v3382_v11 = vld [vmem:[%s4179_s14 + $0x48] ss:$12 sps:$4 sm:$0xff]   ;;  %v3385_v13 = vld [vmem:[%s4179_s14 + $0x30] ss:$12 sps:$4 sm:$0xff]  }
  0xeb   : > { %v3383_v12 = vld [vmem:[%s4179_s14 + $0x34] ss:$12 sps:$4 sm:$0xff]   ;;  %v3386_v14 = vld [vmem:[%s4179_s14 + $0x1c] ss:$12 sps:$4 sm:$0xff]   ;;  %v3388_v15 = vld [vmem:[%s4179_s14 + $0x18] ss:$12 sps:$4 sm:$0xff]  }
  0xec   : > { %v3389_v16 = vld [vmem:[%s4179_s14 + $0x4] ss:$12 sps:$4 sm:$0xff]   ;;  %v3391_v17 = vld [vmem:[%s4179_s14] ss:$12 sps:$4 sm:$0xff]   ;;  %v3395_v24 = vld [vmem:[%s4179_s14 + $0x68] ss:$12 sps:$4 sm:$0xff]  }
  0xed   : > { %1008 = vmatpush1.bf16.msra.mxu0 %v3373_v5  ;;  %v4260_v18 = vld [vmem:[%s4237_s7] sm:$0xff]  ;;  %v4282_v30 = vshrl.u32 %v862_v29, 7  ;;  %vm3817_vm0 = vmmov 0   ;;  %v4293_v33 = vld [vmem:[%s4185_s29] sm:$0x7]  ;;  %s3818_s0 = smov 32  }
  0xee   : > { %1009 = vmatprep.subr.bf16.mxu0 %v3374_v6  ;;  %v827_v19 = vpack.c.bf16 %v4260_v18, %v4260_v18  ;;  %v3392_v20 = vld [vmem:[%s4179_s14 + $0xb0] ss:$12 sps:$4 sm:$0xff]   ;;  %v3393_v22 = vld [vmem:[%s4179_s14 + $0x98] ss:$12 sps:$4 sm:$0xff]   ;;  %v3394_v23 = vld [vmem:[%s4179_s14 + $0x80] ss:$12 sps:$4 sm:$0xff]   ;;  %3144 = vmatprep.mubr.msk.bf16.mxu1 %vm3817_vm0, %v3816_v21 }
  0xef   : > { %3129 = vmatpush3.bf16.msra.mxu1 %v3392_v20  ;;  %v3396_v25 = vld [vmem:[%s4179_s14 + $0x50] ss:$12 sps:$4 sm:$0xff]   ;;  %v3397_v26 = vld [vmem:[%s4179_s14 + $0x38] ss:$12 sps:$4 sm:$0xff]   ;;  %v3398_v27 = vld [vmem:[%s4179_s14 + $0x20] ss:$12 sps:$4 sm:$0xff]  }
  0xf0   : > { %3130 = vmatprep.subr.bf16.mxu1 %v3816_v21  ;;  %v3399_v28 = vld [vmem:[%s4179_s14 + $0x8] ss:$12 sps:$4 sm:$0xff]   ;;  %v868_v31 = vsub.s32 1, %v4282_v30  ;;  %v864_v32 = vsub.s32 0, %v4282_v30  ;;  %s3819_s2 = smov 96   ;;  %s3820_s10 = smov 64  }
  0xf1   : > { %1010 = vmatpush1.bf16.msra.mxu0 %v3376_v7  ;;  %v3821_v44 = vmov 1983009808   ;;  %v3822_v46 = vmov 1934713408   ;;  %vm1600_vm1 = vcmask 261120   ;;  %s4711_s26 = scalar_lea.vmem [#allocation5], %s4160_s12 }
  0xf2   : > { %1011 = vmatprep.subr.bf16.mxu0 %v3377_v8  ;;  %v869_v34 = vrot.slane %v4293_v33, %v868_v31  ;;  %v865_v36 = vrot.slane %v4293_v33, %v864_v32  ;;  %v1097_v45 = vunpack.c.l.s4 %v3821_v44  ;;  %v1114_v47 = vunpack.c.l.s4 %v3822_v46  ;;  %s4712_s14 = sld [smem:[#allocation45_spill]]  ;;  %s2672_s30 = scalar_lea.sflag [#allocation4], %s4160_s12 }
  0xf3   : > { %3131 = vmatpush3.bf16.msra.mxu1 %v3393_v22  ;;  %vm1785_vm2 = vcmask 64512   ;;  %vm1829_vm3 = vcmask 1043456   ;;  %vm2168_vm4 = vcmask 523264   ;;  %vm2170_vm5 = vcmask 785408   ;;  %s4718_s27 = sld [smem:[#allocation27_spill]] }
  0xf4   : > { %3132 = vmatprep.subr.bf16.mxu1 %v3816_v21  ;;  %v1098_v48 = vunpack.c.0.s8 %v1097_v45  ;;  %v1115_v49 = vunpack.c.0.s8 %v1114_v47  ;;  %s4722_s15 = sld [smem:[#allocation54_spill]] }
  0xf5   : > { %1012 = vmatpush1.bf16.msra.mxu0 %v3379_v9 }
  0xf6   : > { %1013 = vmatprep.subr.bf16.mxu0 %v3380_v10  ;;  %v4308_v50 = vsub.s32 %v1098_v48, %v4282_v30  ;;  %v4311_v53 = vsub.s32 %v1115_v49, %v4282_v30 }
  0xf7   : > { %3133 = vmatpush3.bf16.msra.mxu1 %v3394_v23 }
  0xf8   : > { %3134 = vmatprep.subr.bf16.mxu1 %v3816_v21  ;;  %s4713_s29 = scalar_lea.vmem %s4712_s14, %s4201_s9 }
  0xf9   : > { %1014 = vmatpush1.bf16.msra.mxu0 %v3382_v11 }
  0xfa   : > { %1015 = vmatprep.subr.bf16.mxu0 %v3383_v12  ;;  %s4723_s14 = smov %s4722_s15 }
  0xfb   : > { %3135 = vmatpush3.bf16.msra.mxu1 %v3395_v24 }
  0xfc   : > { %3136 = vmatprep.subr.bf16.mxu1 %v3816_v21 }
  0xfd   : > { %1016 = vmatpush1.bf16.msra.mxu0 %v3385_v13 }
  0xfe   : > { %1017 = vmatprep.subr.bf16.mxu0 %v3386_v14 }
  0xff   : > { %3137 = vmatpush3.bf16.msra.mxu1 %v3396_v25 }
 0x100   : > { %3138 = vmatprep.subr.bf16.mxu1 %v3816_v21 }
 0x101   : > { %1018 = vmatpush1.bf16.msra.mxu0 %v3388_v15 }
 0x102   : > { %1019 = vmatprep.subr.bf16.mxu0 %v3389_v16 }
 0x103   : > { %3139 = vmatpush3.bf16.msra.mxu1 %v3397_v26 }
 0x104   : > { %3140 = vmatprep.subr.bf16.mxu1 %v3816_v21 }
 0x105   : > { %1020 = vmatpush1.bf16.msra.mxu0 %v3391_v17 }
 0x106   : > { %3172 = vmatprep.subr.bf16.mxu0 %v3816_v21 }
 0x107   : > { %3141 = vmatpush3.bf16.msra.mxu1 %v3398_v27 }
 0x108   : > { %1038 = vmatmul.mubr.bf16.vlgmr.msra.gmra.mxu0 %v827_v19  ;;  %3142 = vmatprep.subr.bf16.mxu1 %v3816_v21 }
 0x109   : > { %3174 = vmatprep.mubr.msk.bf16.mxu0 %vm3817_vm0, %v3816_v21 }
 0x10b   : > { %3143 = vmatpush3.bf16.msra.mxu1 %v3399_v28 }
 0x10c   : > { %3148 = vmatprep.subr.bf16.mxu1 %v3816_v21 }
 0x10e   : > { %3145 = vmatmul.mubr.bf16.vlgmr.msra.gmra.mxu1 %v827_v19 }
 0x10f   : > { %3150 = vmatprep.mubr.msk.bf16.mxu1 %vm3817_vm0, %v3816_v21 }
 0x1c8   : > { %v1039_v35 = vpop.f32.mrf.mxu0 }
 0x1c9   : > { %v1040_v40 = vadd.f32 %v1039_v35, %v865_v36 }
 0x1ca   : > { %v1041_v37 = vpop.f32.mrf.mxu0 }
 0x1cb   : > { %v1042_v38 = vadd.f32 %v1041_v37, %v869_v34  ;;  %v1086_v43 = vpack.c.bf16 %v1040_v40, %v1040_v40 }
 0x1cc   : > { %v1043_v39 = vpop.f32.mrf.mxu0 }
 0x1cd   : > { %v1087_v41 = vpack.c.bf16 %v1042_v38, %v1042_v38  ;;  %v1102_v7 = vrot.slane %v1086_v43, %v4308_v50 }
 0x1ce   : > { %v1044_v42 = vpop.f32.mrf.mxu0 }
 0x1cf   : > { %1262 = vrot.lane.b32.xlu1 %v1087_v41, %s3818_s0  ;;  %1258 = vrot.lane.b32.xlu0 %v1087_v41, %s3819_s2  ;;  %v1270_v63 = vrot.slane %v1087_v41, %v4308_v50 }
 0x1d3   : > { %1260 = vrot.lane.b32.xlu0 %v1087_v41, %s3820_s10  ;;  %1090 = vrot.lane.b32.xlu1 %v1086_v43, %s3819_s2 }
 0x1d7   : > { %1092 = vrot.lane.b32.xlu0 %v1086_v43, %s3820_s10  ;;  %1094 = vrot.lane.b32.xlu1 %v1086_v43, %s3818_s0 }
 0x241   : > { %v1263_v51 = vpop.permute.xlu1 %1262  ;;  %v1259_v52 = vpop.permute.xlu0 %1258 }
 0x242   : > { %v1312_v54 = vrot.slane %v1263_v51, %v4308_v50  ;;  %v1304_v55 = vrot.slane %v1259_v52, %v4308_v50 }
 0x244   : > { %v1313_v56 = vcombine.low %v1304_v55, %v1312_v54  ;;  %v1314_v57 = vcombine.high %v1304_v55, %v1312_v54 }
 0x245   : > { %v1261_v58 = vpop.permute.xlu0 %1260  ;;  %v1091_v59 = vpop.permute.xlu1 %1090 }
 0x246   : > { %v1321_v60 = vrot.slane %v1313_v56, %v4311_v53  ;;  %v1328_v61 = vrot.slane %v1314_v57, %v4311_v53  ;;  %v1278_v62 = vrot.slane %v1261_v58, %v4308_v50  ;;  %v1136_v5 = vrot.slane %v1091_v59, %v4308_v50 }
 0x248   : > { %v1329_v0 = vcombine.high %v1321_v60, %v3815_v3  ;;  %v1330_v1 = vcombine.high %v1328_v61, %v3815_v3  ;;  %v1279_v2 = vcombine.low %v1270_v63, %v1278_v62  ;;  %v1280_v4 = vcombine.high %v1270_v63, %v1278_v62 }
 0x249   : > { %v1093_v6 = vpop.permute.xlu0 %1092  ;;  %v1095_v8 = vpop.permute.xlu1 %1094  ;;  %v1336_v9 = vshrl.u32 %v1321_v60, 16  ;;  %v1352_v10 = vshrl.u32 %v1328_v61, 16 }
 0x24a   : > { %v1110_v11 = vrot.slane %v1093_v6, %v4308_v50  ;;  %v1144_v12 = vrot.slane %v1095_v8, %v4308_v50  ;;  %v1344_v13 = vshrl.u32 %v1329_v0, 16  ;;  %v1360_v14 = vshrl.u32 %v1330_v1, 16 }
 0x24b   : > { %v1287_v15 = vrot.slane %v1279_v2, %v4311_v53  ;;  %v1294_v16 = vrot.slane %v1280_v4, %v4311_v53 }
 0x24c   : > { %v1111_v17 = vcombine.low %v1102_v7, %v1110_v11  ;;  %v1112_v19 = vcombine.high %v1102_v7, %v1110_v11  ;;  %v1145_v20 = vcombine.low %v1136_v5, %v1144_v12  ;;  %v1146_v22 = vcombine.high %v1136_v5, %v1144_v12 }
 0x24d   : > { %v1295_v23 = vcombine.high %v1287_v15, %v3815_v3  ;;  %v1296_v24 = vcombine.high %v1294_v16, %v3815_v3  ;;  %v1333_v25 = vpack.i.b16 %v1321_v60, %v1287_v15  ;;  %v1335_v26 = vshrl.u32 %v1287_v15, 16 }
 0x24e   : > { %v1349_v27 = vpack.i.b16 %v1328_v61, %v1294_v16  ;;  %v1351_v28 = vshrl.u32 %v1294_v16, 16  ;;  %v1119_v29 = vrot.slane %v1111_v17, %v4311_v53  ;;  %v1126_v34 = vrot.slane %v1112_v19, %v4311_v53 }
 0x24f   : > { %v1337_v35 = vpack.i.b16 %v1336_v9, %v1335_v26  ;;  %v1341_v36 = vpack.i.b16 %v1329_v0, %v1295_v23  ;;  %v1343_v37 = vshrl.u32 %v1295_v23, 16  ;;  %v1357_v38 = vpack.i.b16 %v1330_v1, %v1296_v24 }
 0x250   : > { %v1353_v39 = vpack.i.b16 %v1352_v10, %v1351_v28  ;;  %v1359_v40 = vshrl.u32 %v1296_v24, 16  ;;  %v1363_v41 = vcombine.low %v1333_v25, %v1349_v27  ;;  %v1127_v42 = vcombine.high %v1119_v29, %v3815_v3 }
 0x251   : > { %v1345_v43 = vpack.i.b16 %v1344_v13, %v1343_v37  ;;  %v1371_v44 = vcombine.low %v1341_v36, %v1357_v38  ;;  %v1128_v45 = vcombine.high %v1126_v34, %v3815_v3  ;;  %v1167_v49 = vshrl.u32 %v1119_v29, 16 }
 0x252   : > { %v1361_v46 = vpack.i.b16 %v1360_v14, %v1359_v40  ;;  %v1370_v47 = vrot.slane %v1363_v41, %v4308_v50  ;;  %v1388_v48 = vcombine.low %v1337_v35, %v1353_v39  ;;  %v1175_v51 = vshrl.u32 %v1127_v42, 16 }
 0x253   : > { %v1183_v52 = vshrl.u32 %v1126_v34, 16  ;;  %v1153_v54 = vrot.slane %v1145_v20, %v4311_v53  ;;  %v1160_v55 = vrot.slane %v1146_v22, %v4311_v53  ;;  %v1191_v57 = vshrl.u32 %v1128_v45, 16 }
 0x254   : > { %v1396_v56 = vcombine.low %v1345_v43, %v1361_v46  ;;  %v1378_v58 = vrot.slane %v1371_v44, %v4308_v50  ;;  %v1395_v59 = vrot.slane %v1388_v48, %v4308_v50 }
 0x255   : > { %v1161_v60 = vcombine.high %v1153_v54, %v3815_v3  ;;  %v1162_v61 = vcombine.high %v1160_v55, %v3815_v3  ;;  %v1165_v62 = vpack.i.b16 %v1153_v54, %v1119_v29  ;;  %v1168_v63 = vshrl.u32 %v1153_v54, 16 }
 0x256   : > { %v1181_v0 = vpack.i.b16 %v1160_v55, %v1126_v34  ;;  %v1184_v1 = vshrl.u32 %v1160_v55, 16  ;;  %v1379_v2 = vcombine.low %v1370_v47, %v1378_v58  ;;  %v1403_v4 = vrot.slane %v1396_v56, %v4308_v50 }
 0x257   : > { %v1169_v5 = vpack.i.b16 %v1168_v63, %v1167_v49  ;;  %v1173_v6 = vpack.i.b16 %v1161_v60, %v1127_v42  ;;  %v1176_v7 = vshrl.u32 %v1161_v60, 16  ;;  %v1189_v8 = vpack.i.b16 %v1162_v61, %v1128_v45 }
 0x258   : > { %v1185_v9 = vpack.i.b16 %v1184_v1, %v1183_v52  ;;  %v1192_v10 = vshrl.u32 %v1162_v61, 16  ;;  %v1195_v12 = vcombine.low %v1165_v62, %v1181_v0  ;;  %v1404_v14 = vcombine.low %v1395_v59, %v1403_v4  ;;  %v1080_v62 = vpop.f32.mrf.mxu1 }
 0x259   : > { %v1177_v11 = vpack.i.b16 %v1176_v7, %v1175_v51  ;;  %v1203_v13 = vcombine.low %v1173_v6, %v1189_v8  ;;  %v1386_v19 = vrot.slane %v1379_v2, %v4311_v53  ;;  %v872_v60 = vsub.s32 2, %v4282_v30 }
 0x25a   : > { %v1193_v15 = vpack.i.b16 %v1192_v10, %v1191_v57  ;;  %v1220_v16 = vcombine.low %v1169_v5, %v1185_v9  ;;  %v1411_v20 = vrot.slane %v1404_v14, %v4311_v53  ;;  %v1202_v23 = vrot.slane %v1195_v12, %v4308_v50  ;;  %v3146_v0 = vpop.f32.mrf.mxu1  ;;  %v3008_v5 = vld [vmem:[%s4711_s26] ss:$0 sm:$0xff] }
 0x25b   : > { %v1210_v17 = vrot.slane %v1203_v13, %v4308_v50  ;;  %v1416_v35 = vshrl.u32 %v1386_v19, 16  ;;  %v1387_v43 = vcombine.high %v1386_v19, %v3815_v3  ;;  %v873_v61 = vrot.slane %v4293_v33, %v872_v60 }
 0x25c   : > { %v1228_v22 = vcombine.low %v1177_v11, %v1193_v15  ;;  %v1415_v24 = vpack.i.b16 %v1411_v20, %v1386_v19  ;;  %v1227_v25 = vrot.slane %v1220_v16, %v4308_v50  ;;  %v1417_v29 = vshrl.u32 %v1411_v20, 16  ;;  %v1083_v2 = vpop.f32.mrf.mxu1 }
 0x25d   : > { %v1211_v27 = vcombine.low %v1202_v23, %v1210_v17  ;;  %v1412_v41 = vcombine.high %v1411_v20, %v3815_v3  ;;  %v1422_v51 = vshrl.u32 %v1387_v43, 16  ;;  %v1081_v63 = vadd.f32 %v1080_v62, %v873_v61 }
 0x25e   : > { %v1235_v26 = vrot.slane %v1228_v22, %v4308_v50  ;;  %v1605_v28 = vsel %vm1600_vm1, %v1415_v24, 0  ;;  %v1418_v38 = vpack.i.b16 %v1417_v29, %v1416_v35  ;;  %v3147_v4 = vpop.f32.mrf.mxu1 }
 0x25f   : > { %3149 = vmatpush3.bf16.xpose.msra.mxu1 %v1605_v28  ;;  %v1218_v37 = vrot.slane %v1211_v27, %v4311_v53  ;;  %v1421_v45 = vpack.i.b16 %v1412_v41, %v1387_v43  ;;  %v1423_v48 = vshrl.u32 %v1412_v41, 16  ;;  %v1088_v1 = vpack.c.bf16 %v1081_v63, %v1081_v63 }
 0x260   : > { %v1236_v34 = vcombine.low %v1227_v25, %v1235_v26  ;;  %3154 = vmatprep.subr.bf16.mxu1 %v3816_v21  ;;  %v1651_v40 = vsel %vm1600_vm1, %v1418_v38, 0 }
 0x261   : > { %v1248_v44 = vshrl.u32 %v1218_v37, 16  ;;  %v1697_v47 = vsel %vm1600_vm1, %v1421_v45, 0  ;;  %v1219_v52 = vcombine.high %v1218_v37, %v3815_v3  ;;  %v1424_v54 = vpack.i.b16 %v1423_v48, %v1422_v51  ;;  %1426 = vrot.lane.b32.xlu0 %v1088_v1, %s3819_s2 }
 0x262   : > { %v1243_v36 = vrot.slane %v1236_v34, %v4311_v53 }
 0x263   : > { %v1743_v56 = vsel %vm1600_vm1, %v1424_v54, 0  ;;  %v1254_v58 = vshrl.u32 %v1219_v52, 16 }
 0x264   : > { %v1247_v39 = vpack.i.b16 %v1243_v36, %v1218_v37  ;;  %v1249_v42 = vshrl.u32 %v1243_v36, 16  ;;  %v1244_v49 = vcombine.high %v1243_v36, %v3815_v3 }
 0x266   : > { %3151 = vmatmul.mubr.msk.bf16.vlgmr.msra.gmra.mxu1 %vm1600_vm1, %v1247_v39  ;;  %v1250_v46 = vpack.i.b16 %v1249_v42, %v1248_v44  ;;  %v1253_v55 = vpack.i.b16 %v1244_v49, %v1219_v52  ;;  %v1255_v57 = vshrl.u32 %v1244_v49, 16  ;;  %v1438_v49 = vrot.slane %v1088_v1, %v4308_v50 }
 0x267   : > { %3155 = vmatpush3.bf16.xpose.msra.mxu1 %v1651_v40  ;;  %3156 = vmatprep.mubr.msk.bf16.mxu1 %vm3817_vm0, %v3816_v21 }
 0x268   : > { %3160 = vmatprep.subr.bf16.mxu1 %v3816_v21  ;;  %v1256_v59 = vpack.i.b16 %v1255_v57, %v1254_v58 }
 0x26e   : > { %3157 = vmatmul.mubr.msk.bf16.vlgmr.msra.gmra.mxu1 %vm1600_vm1, %v1250_v46 }
 0x26f   : > { %3161 = vmatpush3.bf16.xpose.msra.mxu1 %v1697_v47  ;;  %3162 = vmatprep.mubr.msk.bf16.mxu1 %vm3817_vm0, %v3816_v21 }
 0x270   : > { %3166 = vmatprep.subr.bf16.mxu1 %v3816_v21 }
 0x276   : > { %3163 = vmatmul.mubr.msk.bf16.vlgmr.msra.gmra.mxu1 %vm1600_vm1, %v1253_v55 }
 0x277   : > { %3167 = vmatpush3.bf16.xpose.msra.mxu1 %v1743_v56  ;;  %3168 = vmatprep.mubr.msk.bf16.mxu1 %vm3817_vm0, %v3816_v21 }
 0x278   : > { %3178 = vmatprep.subr.bf16.mxu1 %v3816_v21 }
 0x27e   : > { %3169 = vmatmul.mubr.msk.bf16.vlgmr.msra.gmra.mxu1 %vm1600_vm1, %v1256_v59 }
 0x27f   : > { %3180 = vmatprep.mubr.msk.bf16.mxu1 %vm3817_vm0, %v3816_v21 }
 0x2d3   : > { %v1427_v35 = vpop.permute.xlu0 %1426 }
 0x2d4   : > { %v1472_v41 = vrot.slane %v1427_v35, %v4308_v50 }
 0x326   : > { %v1641_v6 = vpop.f32.mrf.mxu1 }
 0x327   : > { %v1642_v7 = vadd.f32 %v3008_v5, %v1641_v6 }
 0x328   : > { %v3152_v8 = vpop.f32.mrf.mxu1 }
 0x329   : > { %v1786_v9 = vsel %vm1785_vm2, %v1642_v7, -inf }
 0x32a   : > { %1787 = vmax.xlane.f32.xlu0 %v1786_v9  ;;  %v1644_v10 = vpop.f32.mrf.mxu1 }
 0x32c   : > { %v3153_v11 = vpop.f32.mrf.mxu1 }
 0x32e   : > { %v1687_v33 = vpop.f32.mrf.mxu1 }
 0x32f   : > { %v1688_v12 = vadd.f32 %v3008_v5, %v1687_v33 }
 0x330   : > { %v3158_v13 = vpop.f32.mrf.mxu1 }
 0x331   : > { %v1789_v14 = vsel %vm1785_vm2, %v1688_v12, -inf }
 0x332   : > { %1790 = vmax.xlane.f32.xlu1 %v1789_v14  ;;  %v1690_v15 = vpop.f32.mrf.mxu1 }
 0x334   : > { %v3159_v16 = vpop.f32.mrf.mxu1 }
 0x336   : > { %v1733_v17 = vpop.f32.mrf.mxu1 }
 0x337   : > { %v4386_v29 = vadd.f32 %v3008_v5, %v1733_v17 }
 0x338   : > { %v3164_v19 = vpop.f32.mrf.mxu1 }
 0x339   : > { %v1792_v34 = vsel %vm1785_vm2, %v4386_v29, -inf }
 0x33a   : > { %v1736_v20 = vpop.f32.mrf.mxu1 }
 0x33c   : > { %v3165_v22 = vpop.f32.mrf.mxu1 }
 0x33e   : > { %v1779_v23 = vpop.f32.mrf.mxu1 }
 0x33f   : > { %v4382_v27 = vadd.f32 %v3008_v5, %v1779_v23 }
 0x340   : > { %1430 = vrot.lane.b32.xlu0 %v1088_v1, %s3818_s0  ;;  %v3170_v24 = vpop.f32.mrf.mxu1 }
 0x341   : > { %v1795_v28 = vsel %vm1785_vm2, %v4382_v27, -inf }
 0x342   : > { %v1782_v25 = vpop.f32.mrf.mxu1 }
 0x343   : > { %1428 = vrot.lane.b32.xlu1 %v1088_v1, %s3820_s10 }
 0x344   : > { %v3171_v26 = vpop.f32.mrf.mxu1 }
 0x35f   : > { %1796 = vmax.xlane.f32.xlu0 %v1795_v28 }
 0x367   : > { %1793 = vmax.xlane.f32.xlu1 %v1792_v34 }
 0x3b3   : > { %v1788_v36 = vpop.xlane.xlu0 %1787 }
 0x3b4   : > { %v1798_v37 = vsub.f32 %v1642_v7, %v1788_v36 }
 0x3b6   : > { %v1802_v38 = vmul.f32 1.442695, %v1798_v37 }
 0x3b7   : > { %v1431_v39 = vpop.permute.xlu0 %1430 }
 0x3b8   : > { %3448 = vpow2.f32 %v1802_v38  ;;  %v1480_v40 = vrot.slane %v1431_v39, %v4308_v50 }
 0x3ba   : > { %v1481_v42 = vcombine.low %v1472_v41, %v1480_v40  ;;  %v1482_v45 = vcombine.high %v1472_v41, %v1480_v40 }
 0x3bb   : > { %v1791_v43 = vpop.xlane.xlu1 %1790 }
 0x3bc   : > { %v1799_v44 = vsub.f32 %v1688_v12, %v1791_v43  ;;  %v1489_v46 = vrot.slane %v1481_v42, %v4311_v53  ;;  %v1496_v52 = vrot.slane %v1482_v45, %v4311_v53 }
 0x3be   : > { %v1804_v47 = vmul.f32 1.442695, %v1799_v44  ;;  %v1497_v56 = vcombine.high %v1489_v46, %v3815_v3  ;;  %v1498_v60 = vcombine.high %v1496_v52, %v3815_v3  ;;  %v1504_v61 = vshrl.u32 %v1489_v46, 16 }
 0x3bf   : > { %v1429_v48 = vpop.permute.xlu1 %1428  ;;  %v1520_v62 = vshrl.u32 %v1496_v52, 16 }
 0x3c0   : > { %v1446_v51 = vrot.slane %v1429_v48, %v4308_v50  ;;  %3450 = vpow2.f32 %v1804_v47  ;;  %v1512_v4 = vshrl.u32 %v1497_v56, 16  ;;  %v1528_v33 = vshrl.u32 %v1498_v60, 16 }
 0x3c2   : > { %v1447_v54 = vcombine.low %v1438_v49, %v1446_v51  ;;  %v1448_v55 = vcombine.high %v1438_v49, %v1446_v51 }
 0x3c4   : > { %v1455_v57 = vrot.slane %v1447_v54, %v4311_v53  ;;  %v1462_v58 = vrot.slane %v1448_v55, %v4311_v53 }
 0x3c5   : > { %v3449_v59 = vpop.eup %3448 }
 0x3c6   : > { %v1463_v63 = vcombine.high %v1455_v57, %v3815_v3  ;;  %v1464_v0 = vcombine.high %v1462_v58, %v3815_v3  ;;  %v1501_v1 = vpack.i.b16 %v1489_v46, %v1455_v57  ;;  %v1503_v2 = vshrl.u32 %v1455_v57, 16 }
 0x3c7   : > { %v1517_v5 = vpack.i.b16 %v1496_v52, %v1462_v58  ;;  %v1519_v6 = vshrl.u32 %v1462_v58, 16  ;;  %v1810_v7 = vsel %vm1785_vm2, %v3449_v59, 0.0  ;;  %v1822_v49 = vpack.c.bf16 %v3449_v59, %v3449_v59 }
 0x3c8   : > { %v1505_v8 = vpack.i.b16 %v1504_v61, %v1503_v2  ;;  %v1509_v9 = vpack.i.b16 %v1497_v56, %v1463_v63  ;;  %v1511_v10 = vshrl.u32 %v1463_v63, 16  ;;  %v1525_v11 = vpack.i.b16 %v1498_v60, %v1464_v0  ;;  %1811 = vadd.xlane.f32.xlu0 %v1810_v7  ;;  %v3405_v7 = vld [vmem:[%s4191_s20 + $0x10] sm:$0xff]  }
 0x3c9   : > { %v1521_v12 = vpack.i.b16 %v1520_v62, %v1519_v6  ;;  %v1527_v13 = vshrl.u32 %v1464_v0, 16  ;;  %v1531_v14 = vcombine.low %v1501_v1, %v1517_v5  ;;  %v3402_v5 = vld [vmem:[%s4191_s20 + $0x28] sm:$0xff]   ;;  %v3404_v6 = vld [vmem:[%s4191_s20 + $0x18] sm:$0xff]  }
 0x3ca   : > { %v1513_v15 = vpack.i.b16 %v1512_v4, %v1511_v10  ;;  %v1539_v16 = vcombine.low %v1509_v9, %v1525_v11  ;;  %v3401_v4 = vld [vmem:[%s4191_s20 + $0x30] sm:$0xff]  }
 0x3cb   : > { %v1529_v17 = vpack.i.b16 %v1528_v33, %v1527_v13  ;;  %v1556_v19 = vcombine.low %v1505_v8, %v1521_v12  ;;  %v1538_v20 = vrot.slane %v1531_v14, %v4308_v50 }
 0x3cc   : > { %v1546_v22 = vrot.slane %v1539_v16, %v4308_v50 }
 0x3cd   : > { %v1564_v23 = vcombine.low %v1513_v15, %v1529_v17  ;;  %v3451_v24 = vpop.eup %3450  ;;  %v1563_v28 = vrot.slane %v1556_v19, %v4308_v50 }
 0x3ce   : > { %v1547_v25 = vcombine.low %v1538_v20, %v1546_v22  ;;  %v1813_v26 = vsel %vm1785_vm2, %v3451_v24, 0.0  ;;  %v1823_v54 = vpack.c.bf16 %v3451_v24, %v3451_v24 }
 0x3cf   : > { %v1571_v34 = vrot.slane %v1564_v23, %v4308_v50  ;;  %1814 = vadd.xlane.f32.xlu1 %v1813_v26 }
 0x3d0   : > { %v1554_v35 = vrot.slane %v1547_v25, %v4311_v53 }
 0x3d1   : > { %v1572_v36 = vcombine.low %v1563_v28, %v1571_v34 }
 0x3d2   : > { %v1555_v37 = vcombine.high %v1554_v35, %v3815_v3  ;;  %v1584_v40 = vshrl.u32 %v1554_v35, 16 }
 0x3d3   : > { %v1579_v38 = vrot.slane %v1572_v36, %v4311_v53 }
 0x3d4   : > { %v1590_v43 = vshrl.u32 %v1555_v37, 16 }
 0x3d5   : > { %v1583_v39 = vpack.i.b16 %v1579_v38, %v1554_v35  ;;  %v1585_v41 = vshrl.u32 %v1579_v38, 16  ;;  %v1580_v42 = vcombine.high %v1579_v38, %v3815_v3 }
 0x3d7   : > { %v1831_v44 = vsel %vm1829_vm3, %v1583_v39, 0  ;;  %v1586_v45 = vpack.i.b16 %v1585_v41, %v1584_v40  ;;  %v1589_v46 = vpack.i.b16 %v1580_v42, %v1555_v37  ;;  %v1591_v47 = vshrl.u32 %v1580_v42, 16 }
 0x3d8   : > { %3173 = vmatpush3.bf16.msra.mxu0 %v1831_v44 }
 0x3d9   : > { %v1877_v48 = vsel %vm1829_vm3, %v1586_v45, 0  ;;  %3184 = vmatprep.subr.bf16.mxu0 %v3816_v21  ;;  %v1592_v51 = vpack.i.b16 %v1591_v47, %v1590_v43  ;;  %v1923_v52 = vsel %vm1829_vm3, %v1589_v46, 0 }
 0x3da   : > { %3179 = vmatpush3.bf16.msra.mxu1 %v1877_v48 }
 0x3db   : > { %3175 = vmatmul.mubr.msk.bf16.vlgmr.msra.gmra.mxu0 %vm1785_vm2, %v1822_v49  ;;  %3190 = vmatprep.subr.bf16.mxu1 %v3816_v21  ;;  %v1969_v55 = vsel %vm1829_vm3, %v1592_v51, 0 }
 0x3dc   : > { %3185 = vmatpush3.bf16.msra.mxu0 %v1923_v52  ;;  %3186 = vmatprep.mubr.msk.bf16.mxu0 %vm3817_vm0, %v3816_v21 }
 0x3dd   : > { %3181 = vmatmul.mubr.msk.bf16.vlgmr.msra.gmra.mxu1 %vm1785_vm2, %v1823_v54  ;;  %3196 = vmatprep.subr.bf16.mxu0 %v3816_v21 }
 0x3de   : > { %3191 = vmatpush3.bf16.msra.mxu1 %v1969_v55  ;;  %3192 = vmatprep.mubr.msk.bf16.mxu1 %vm3817_vm0, %v3816_v21 }
 0x3e8   : > { %v1797_v56 = vpop.xlane.xlu0 %1796 }
 0x3e9   : > { %v1801_v57 = vsub.f32 %v4382_v27, %v1797_v56 }
 0x3eb   : > { %v1808_v58 = vmul.f32 1.442695, %v1801_v57  ;;  %v3406_v57 = vld [vmem:[%s4191_s20 + $0x8] sm:$0xff]  }
 0x3ed   : > { %3452 = vpow2.f32 %v1808_v58 }
 0x3f0   : > { %v1794_v59 = vpop.xlane.xlu1 %1793 }
 0x3f1   : > { %v1800_v60 = vsub.f32 %v4386_v29, %v1794_v59  ;;  %v3400_v29 = vld [vmem:[%s4191_s20 + $0x38] sm:$0xff]  }
 0x3f3   : > { %v1806_v61 = vmul.f32 1.442695, %v1800_v60 }
 0x3f5   : > { %3454 = vpow2.f32 %v1806_v61 }
 0x3fa   : > { %v3453_v62 = vpop.eup %3452 }
 0x3fb   : > { %v1819_v63 = vsel %vm1785_vm2, %v3453_v62, 0.0  ;;  %v1825_v0 = vpack.c.bf16 %v3453_v62, %v3453_v62 }
 0x3fc   : > { %1820 = vadd.xlane.f32.xlu1 %v1819_v63 }
 0x3fd   : > { %3193 = vmatmul.mubr.msk.bf16.vlgmr.msra.gmra.mxu1 %vm1785_vm2, %v1825_v0 }
 0x3fe   : > { %2454 = vmatprep.mubr.bf16.mxu1 %v3815_v3  ;;  %v3403_v3 = vld [vmem:[%s4191_s20 + $0x20] sm:$0xff]  }
 0x402   : > { %v3455_v27 = vpop.eup %3454 }
 0x403   : > { %v1816_v1 = vsel %vm1785_vm2, %v3455_v27, 0.0  ;;  %v1824_v2 = vpack.c.bf16 %v3455_v27, %v3455_v27 }
 0x404   : > { %1817 = vadd.xlane.f32.xlu0 %v1816_v1 }
 0x405   : > { %3187 = vmatmul.mubr.msk.bf16.vlgmr.msra.gmra.mxu0 %vm1785_vm2, %v1824_v2 }
 0x406   : > { %3212 = vmatprep.mubr.msk.bf16.mxu0 %vm3817_vm0, %v3816_v21  ;;  %3197 = vmatpush3.bf16.msra.mxu0 %v3400_v29 }
 0x407   : > { %3198 = vmatprep.subr.bf16.mxu0 %v3816_v21 }
 0x40a   : > { %3199 = vmatpush3.bf16.msra.mxu0 %v3401_v4 }
 0x40b   : > { %3200 = vmatprep.subr.bf16.mxu0 %v3816_v21 }
 0x40e   : > { %3201 = vmatpush3.bf16.msra.mxu0 %v3402_v5  ;;  %v3407_v5 = vld [vmem:[%s4191_s20] sm:$0xff]  }
 0x40f   : > { %3202 = vmatprep.subr.bf16.mxu0 %v3816_v21 }
 0x412   : > { %3203 = vmatpush3.bf16.msra.mxu0 %v3403_v3 }
 0x413   : > { %3204 = vmatprep.subr.bf16.mxu0 %v3816_v21 }
 0x416   : > { %3205 = vmatpush3.bf16.msra.mxu0 %v3404_v6 }
 0x417   : > { %3206 = vmatprep.subr.bf16.mxu0 %v3816_v21 }
 0x41a   : > { %3207 = vmatpush3.bf16.msra.mxu0 %v3405_v7 }
 0x41b   : > { %3208 = vmatprep.subr.bf16.mxu0 %v3816_v21 }
 0x41e   : > { %3209 = vmatpush3.bf16.msra.mxu0 %v3406_v57  ;;  %v3433_v57 = vld [vmem:[%s4233_s8 + $0x38] sm:$0xff]  }
 0x41f   : > { %3210 = vmatprep.subr.bf16.mxu0 %v3816_v21 }
 0x422   : > { %3211 = vmatpush3.bf16.msra.mxu0 %v3407_v5 }
 0x451   : > { %v1812_v16 = vpop.xlane.xlu0 %1811 }
 0x458   : > { %v1815_v15 = vpop.xlane.xlu1 %1814 }
 0x485   : > { %v1821_v17 = vpop.xlane.xlu1 %1820 }
 0x486   : > { %3456 = vrcp.f32 %v1821_v17 }
 0x487   : > { %3458 = vrcp.f32 %v1815_v15 }
 0x488   : > { %3460 = vrcp.f32 %v1812_v16 }
 0x48d   : > { %v1818_v19 = vpop.xlane.xlu0 %1817 }
 0x48e   : > { %3462 = vrcp.f32 %v1818_v19 }
 0x493   : > { %v3457_v23 = vpop.eup %3456 }
 0x494   : > { %v3459_v26 = vpop.eup %3458 }
 0x495   : > { %v3461_v34 = vpop.eup %3460 }
 0x49b   : > { %v1867_v8 = vpop.f32.mrf.mxu0  ;;  %v3463_v36 = vpop.eup %3462 }
 0x49c   : > { %v2015_v38 = vmul.f32 %v3461_v34, %v1867_v8 }
 0x49d   : > { %v3176_v9 = vpop.f32.mrf.mxu0  ;;  %v1913_v10 = vpop.f32.mrf.mxu1 }
 0x49e   : > { %v2016_v35 = vmul.f32 %v3459_v26, %v1913_v10 }
 0x49f   : > { %v1870_v11 = vpop.f32.mrf.mxu0  ;;  %v3182_v33 = vpop.f32.mrf.mxu1 }
 0x4a1   : > { %v3177_v12 = vpop.f32.mrf.mxu0  ;;  %v1916_v13 = vpop.f32.mrf.mxu1 }
 0x4a3   : > { %v3183_v14 = vpop.f32.mrf.mxu1 }
 0x4bd   : > { %v2005_v20 = vpop.f32.mrf.mxu1 }
 0x4be   : > { %v2018_v25 = vmul.f32 %v3457_v23, %v2005_v20 }
 0x4bf   : > { %v3194_v22 = vpop.f32.mrf.mxu1 }
 0x4c0   : > { %v2035_v39 = vcombine.low %v2016_v35, %v2018_v25  ;;  %v2036_v40 = vcombine.high %v2016_v35, %v2018_v25  ;;  %v3019_v22 = vld [vmem:[%s4713_s29] ss:$0 sm:$0xff]  ;;  %v3408_v35 = vld [vmem:[%s4193_s11 + $0x70] ss:$8 sps:$4 sm:$0xff]  }
 0x4c1   : > { %v2008_v24 = vpop.f32.mrf.mxu1 }
 0x4c2   : > { %v2043_v46 = vrot.slane %v2035_v39, %v4308_v50  ;;  %v2050_v47 = vrot.slane %v2036_v40, %v4308_v50 }
 0x4c3   : > { %v3195_v28 = vpop.f32.mrf.mxu1 }
 0x4c5   : > { %v1959_v37 = vpop.f32.mrf.mxu0 }
 0x4c6   : > { %v2017_v41 = vmul.f32 %v3463_v36, %v1959_v37  ;;  %v3410_v36 = vld [vmem:[%s4193_s11 + $0x74] ss:$8 sps:$4 sm:$0xff]   ;;  %v3413_v37 = vld [vmem:[%s4193_s11 + $0x64] ss:$8 sps:$4 sm:$0xff]  }
 0x4c7   : > { %v3188_v42 = vpop.f32.mrf.mxu0  ;;  %2422 = vmatprep.subr.bf16.mxu1 %v3410_v36 }
 0x4c8   : > { %v2019_v43 = vcombine.low %v2015_v38, %v2017_v41  ;;  %v2020_v44 = vcombine.high %v2015_v38, %v2017_v41  ;;  %2423 = vmatpush1.bf16.msra.mxu1 %v3408_v35  ;;  %v3411_v38 = vld [vmem:[%s4193_s11 + $0x60] ss:$8 sps:$4 sm:$0xff]   ;;  %v3416_v42 = vld [vmem:[%s4193_s11 + $0x54] ss:$8 sps:$4 sm:$0xff]  }
 0x4c9   : > { %v1962_v45 = vpop.f32.mrf.mxu0  ;;  %2424 = vmatprep.subr.bf16.mxu1 %v3413_v37 }
 0x4ca   : > { %v2027_v48 = vrot.slane %v2019_v43, %v4308_v50  ;;  %v2034_v49 = vrot.slane %v2020_v44, %v4308_v50  ;;  %v3414_v43 = vld [vmem:[%s4193_s11 + $0x50] ss:$8 sps:$4 sm:$0xff]   ;;  %v3419_v44 = vld [vmem:[%s4193_s11 + $0x44] ss:$8 sps:$4 sm:$0xff]   ;;  %v3417_v45 = vld [vmem:[%s4193_s11 + $0x40] ss:$8 sps:$4 sm:$0xff]  }
 0x4cb   : > { %v3189_v51 = vpop.f32.mrf.mxu0 }
 0x4cc   : > { %v2051_v52 = vcombine.low %v2027_v48, %v2043_v46  ;;  %v2052_v54 = vcombine.high %v2027_v48, %v2043_v46  ;;  %v2067_v55 = vcombine.low %v2034_v49, %v2050_v47  ;;  %v2068_v56 = vcombine.high %v2034_v49, %v2050_v47  ;;  %2425 = vmatpush1.bf16.msra.mxu1 %v3411_v38  ;;  %v3422_v46 = vld [vmem:[%s4193_s11 + $0x34] ss:$8 sps:$4 sm:$0xff]   ;;  %v3420_v47 = vld [vmem:[%s4193_s11 + $0x30] ss:$8 sps:$4 sm:$0xff]   ;;  %v3425_v48 = vld [vmem:[%s4193_s11 + $0x24] ss:$8 sps:$4 sm:$0xff]  }
 0x4cd   : > { %2426 = vmatprep.subr.bf16.mxu1 %v3416_v42  ;;  %v3423_v49 = vld [vmem:[%s4193_s11 + $0x20] ss:$8 sps:$4 sm:$0xff]   ;;  %v3428_v51 = vld [vmem:[%s4193_s11 + $0x14] ss:$8 sps:$4 sm:$0xff]  }
 0x4ce   : > { %v2059_v58 = vrot.slane %v2051_v52, %v4311_v53  ;;  %v2066_v59 = vrot.slane %v2052_v54, %v4311_v53  ;;  %v2075_v60 = vrot.slane %v2067_v55, %v4311_v53  ;;  %v2082_v61 = vrot.slane %v2068_v56, %v4311_v53  ;;  %v3426_v52 = vld [vmem:[%s4193_s11 + $0x10] ss:$8 sps:$4 sm:$0xff]   ;;  %v3431_v54 = vld [vmem:[%s4193_s11 + $0x4] ss:$8 sps:$4 sm:$0xff]   ;;  %v3429_v55 = vld [vmem:[%s4193_s11] ss:$8 sps:$4 sm:$0xff]  }
 0x4cf   : > { %v3432_v56 = vld [vmem:[%s4233_s8 + $0x78] sm:$0xff]   ;;  %s4714_s11 = sld [smem:[#allocation46_spill]] }
 0x4d0   : > { %v2087_v62 = vcombine.low %v2059_v58, %v2066_v59  ;;  %v3017_v63 = vcombine.high %v2059_v58, %v2066_v59  ;;  %v2103_v0 = vcombine.low %v2075_v60, %v2082_v61  ;;  %v3018_v27 = vcombine.high %v2075_v60, %v2082_v61  ;;  %2427 = vmatpush1.bf16.msra.mxu1 %v3414_v43  ;;  %v3434_v58 = vld [vmem:[%s4233_s8 + $0x70] sm:$0xff]   ;;  %v3436_v60 = vld [vmem:[%s4233_s8 + $0x68] sm:$0xff]  }
 0x4d1   : > { %2428 = vmatprep.subr.bf16.mxu1 %v3419_v44  ;;  %3106 = vmatprep.subr.bf16.mxu0 %v3432_v56  ;;  %v3435_v59 = vld [vmem:[%s4233_s8 + $0x30] sm:$0xff]   ;;  %v3437_v61 = vld [vmem:[%s4233_s8 + $0x28] sm:$0xff]  }
 0x4d2   : > { %v2094_v1 = vrot.slane %v2087_v62, %v4308_v50  ;;  %v2102_v2 = vrot.slane %v3017_v63, %v4308_v50  ;;  %v2110_v29 = vrot.slane %v2103_v0, %v4308_v50  ;;  %v2118_v4 = vrot.slane %v3018_v27, %v4308_v50  ;;  %v3438_v62 = vld [vmem:[%s4233_s8 + $0x60] sm:$0xff]   ;;  %v3440_v0 = vld [vmem:[%s4233_s8 + $0x58] sm:$0xff]  }
 0x4d3   : > { %v3439_v63 = vld [vmem:[%s4233_s8 + $0x20] sm:$0xff]   ;;  %v3441_v27 = vld [vmem:[%s4233_s8 + $0x18] sm:$0xff]  }
 0x4d4   : > { %v2120_v3 = vcombine.high %v2094_v1, %v2102_v2  ;;  %v2136_v6 = vcombine.high %v2110_v29, %v2118_v4  ;;  %v2119_v7 = vcombine.low %v2094_v1, %v2102_v2  ;;  %v2135_v8 = vcombine.low %v2110_v29, %v2118_v4  ;;  %2429 = vmatpush1.bf16.msra.mxu1 %v3417_v45  ;;  %v3442_v1 = vld [vmem:[%s4233_s8 + $0x50] sm:$0xff]   ;;  %v3063_v45 = vld [vmem:[%s815_s22] ss:$0 sm:$0xff]  ;;  %s3823_s22 = smov [#allocation14]  }
 0x4d5   : > { %2430 = vmatprep.subr.bf16.mxu1 %v3422_v46  ;;  %v3443_v2 = vld [vmem:[%s4233_s8 + $0x10] sm:$0xff]   ;;  %s4715_s18 = scalar_lea.vmem %s4714_s11, %s4201_s9  ;;  %s3668_s11 = sshll.u32 %s3823_s22, 4  ;;  %s3669_s11 = int_to_ptr.vmem [resolvable:$false] %s3668_s11 }
 0x4d6   : > { %v2134_v9 = vrot.slane %v2120_v3, %v4311_v53  ;;  %v2150_v10 = vrot.slane %v2136_v6, %v4311_v53  ;;  %v2127_v21 = vrot.slane %v2119_v7, %v4311_v53  ;;  %v2143_v11 = vrot.slane %v2135_v8, %v4311_v53  ;;  %v3028_v6 = vld [vmem:[%s4715_s18] ss:$0 sm:$0xff]  ;;  %s3670_s9 = scalar_lea.vmem %s3669_s11, 256 }
 0x4d7   : > { %v3029_v8 = vld [vmem:[%s805_s1] ss:$0 sm:$0xff] }
 0x4d8   : > { %v2153_v33 = vcombine.low %v2134_v9, %v2150_v10  ;;  %v2152_v12 = vcombine.high %v2127_v21, %v2143_v11  ;;  %v2151_v13 = vcombine.low %v2127_v21, %v2143_v11  ;;  %v2154_v50 = vcombine.high %v2134_v9, %v2150_v10  ;;  %2431 = vmatpush1.bf16.msra.mxu1 %v3420_v47  ;;  %v3444_v11 = vld [vmem:[%s4233_s8 + $0x48] sm:$0xff]  }
 0x4d9   : > { %2432 = vmatprep.subr.bf16.mxu1 %v3425_v48  ;;  %v3064_v47 = vld [vmem:[%s818_s16] ss:$0 sm:$0xff] }
 0x4da   : > { %2160 = vrot.lane.b32.xlu1 %v2153_v33, %s3820_s10  ;;  %2156 = vrot.lane.b32.xlu0 %v2152_v12, %s3818_s0  ;;  %v3445_v33 = vld [vmem:[%s4233_s8 + $0x8] sm:$0xff]   ;;  %v3446_v12 = vld [vmem:[%s4233_s8 + $0x40] sm:$0xff]   ;;  %s2685_s10 = sshll.u32 %s4237_s7, 4  ;;  %s2686_s10 = int_to_ptr.vmem [resolvable:$true] %s2685_s10 }
 0x4db   : > { %s3664_s20 = scalar_lea.vmem %s2686_s10, 128  ;;  %p3671_p10 = scmp.lt.s32.totalorder %s2686_s10, %s3669_s11 }
 0x4dc   : > { %2433 = vmatpush1.bf16.msra.mxu1 %v3423_v49  ;;  %p3665_p4 = scmp.ne.s32.totalorder %s2686_s10, %s3664_s20  ;;  %p3672_p3 = scmp.lt.s32.totalorder %s3670_s9, %s3664_s20 }
 0x4dd   : > { %2434 = vmatprep.subr.bf16.mxu1 %v3428_v51 }
 0x4de   : > { %2164 = vrot.lane.b32.xlu1 %v2154_v50, %s3819_s2  ;;  %v2330_v50 = vld [vmem:[%s4219_s28] sm:$0x3]  ;;  %s3066_s2 = sshll.u32 %s4718_s27, 7  ;;  %p3666_p9 = pnand %p3665_p4, %p3991_p12 }
 0x4df   : > { %s2683_s29 = scalar_lea.hbm %s4722_s15, %s3066_s2  ;;  %p3673_p6 = por %p3672_p3, %p3671_p10 }
 0x4e0   : > { %2435 = vmatpush1.bf16.msra.mxu1 %v3426_v52  ;;  %p3667_p1 = pneg %p3666_p9 }
 0x4e1   : > { %2436 = vmatprep.subr.bf16.mxu1 %v3431_v54 }
 0x4e2   : > { %p3674_p7 = pnand %p3673_p6, %p3667_p1 }
 0x4e4   : > { %2437 = vmatpush1.bf16.msra.mxu1 %v3429_v55 }
 0x54c   : > { %v2161_v14 = vpop.permute.xlu1 %2160  ;;  %v2157_v15 = vpop.permute.xlu0 %2156 }
 0x54d   : > { %v2167_v16 = vsel %vm1600_vm1, %v2151_v13, %v2157_v15  ;;  %v3447_v13 = vld [vmem:[%s4233_s8] sm:$0xff]   ;;  %v2339_v15 = vrot.slane %v2330_v50, %v868_v31 }
 0x54e   : > { %v2169_v17 = vsel %vm2168_vm4, %v2167_v16, %v2161_v14  ;;  %v2335_v14 = vrot.slane %v2330_v50, %v864_v32  ;;  %v3046_v32 = vld [vmem:[%s812_s4] ss:$0 sm:$0xff] }
 0x550   : > { %v2165_v53 = vpop.permute.xlu1 %2164 }
 0x551   : > { %v2171_v19 = vsel %vm2170_vm5, %v2169_v17, %v2165_v53 }
 0x552   : > { %v2172_v20 = vpack.c.bf16 %v2171_v19, %v2171_v19 }
 0x554   : > { %3213 = vmatmul.mubr.bf16.vlgmr.msra.gmra.mxu0 %v2172_v20 }
 0x555   : > { %3107 = vmatpush3.bf16.msra.mxu0 %v3433_v57 }
 0x556   : > { %3108 = vmatprep.subr.bf16.mxu0 %v3434_v58 }
 0x559   : > { %3109 = vmatpush3.bf16.msra.mxu0 %v3435_v59 }
 0x55a   : > { %3110 = vmatprep.subr.bf16.mxu0 %v3436_v60 }
 0x55d   : > { %3111 = vmatpush3.bf16.msra.mxu0 %v3437_v61 }
 0x55e   : > { %3112 = vmatprep.subr.bf16.mxu0 %v3438_v62 }
 0x561   : > { %3113 = vmatpush3.bf16.msra.mxu0 %v3439_v63 }
 0x562   : > { %3114 = vmatprep.subr.bf16.mxu0 %v3440_v0 }
 0x565   : > { %3115 = vmatpush3.bf16.msra.mxu0 %v3441_v27 }
 0x566   : > { %3116 = vmatprep.subr.bf16.mxu0 %v3442_v1 }
 0x569   : > { %3117 = vmatpush3.bf16.msra.mxu0 %v3443_v2 }
 0x56a   : > { %3118 = vmatprep.subr.bf16.mxu0 %v3444_v11 }
 0x56d   : > { %3119 = vmatpush3.bf16.msra.mxu0 %v3445_v33 }
 0x56e   : > { %3120 = vmatprep.subr.bf16.mxu0 %v3446_v12 }
 0x571   : > { %3121 = vmatpush3.bf16.msra.mxu0 %v3447_v13 }
 0x614   : > { %v2278_v23 = vpop.f32.mrf.mxu0 }
 0x615   : > { %v2279_v24 = vadd.f32 %v3019_v22, %v2278_v23 }
 0x616   : > { %v3214_v25 = vpop.f32.mrf.mxu0 }
 0x617   : > { %v2284_v26 = vadd.f32 %v2279_v24, %v4260_v18 }
 0x618   : > { %v2281_v28 = vpop.f32.mrf.mxu0 }
 0x619   : > { %2287 = vadd.xlane.f32.xlu0 %v2284_v26 }
 0x61a   : > { %v3215_v34 = vpop.f32.mrf.mxu0 }
 0x6a2   : > { %v2288_v39 = vpop.xlane.xlu0 %2287 }
 0x6a3   : > { %v2290_v18 = vmul.f32 0.0078125, %v2288_v39 }
 0x6a5   : > { %v2291_v40 = vsub.f32 %v2284_v26, %v2290_v18 }
 0x6a7   : > { %v2292_v41 = vmul.f32 %v2291_v40, %v2291_v40 }
 0x6a9   : > { %2293 = vadd.xlane.f32.xlu1 %v2292_v41 }
 0x732   : > { %v2294_v29 = vpop.xlane.xlu1 %2293 }
 0x733   : > { %v2295_v4 = vmul.f32 0.0078125, %v2294_v29 }
 0x735   : > { %v2296_v5 = vadd.f32 1e-05, %v2295_v4 }
 0x737   : > { %3464 = vrsqrt.f32 %v2296_v5 }
 0x744   : > { %v3465_v3 = vpop.eup %3464 }
 0x745   : > { %v2298_v7 = vmul.f32 %v3465_v3, %v2291_v40 }
 0x747   : > { %v2305_v9 = vmul.f32 %v3028_v6, %v2298_v7 }
 0x749   : > { %v2312_v10 = vadd.f32 %v3029_v8, %v2305_v9 }
 0x74b   : > { %v2313_v21 = vpack.c.bf16 %v2312_v10, %v2312_v10 }
 0x74d   : > { %2455 = vmatmul.mubr.bf16.vlgmr.msra.gmra.mxu1 %v2313_v21 }
 0x80d   : > { %v2456_v16 = vpop.f32.mrf.mxu1 }
 0x80e   : > { %v2457_v53 = vadd.f32 %v2456_v16, %v2335_v14 }
 0x80f   : > { %v2458_v17 = vpop.f32.mrf.mxu1 }
 0x810   : > { %v2459_v19 = vadd.f32 %v2458_v17, %v2339_v15  ;;  %v2463_v20 = vmax.f32 %v2457_v53, 0.0 }
 0x811   : > { %v2460_v22 = vpop.f32.mrf.mxu1 }
 0x812   : > { %v2464_v23 = vmax.f32 %v2459_v19, 0.0  ;;  %v2465_v26 = vpack.c.bf16 %v2463_v20, %v2463_v20 }
 0x813   : > { %v2461_v24 = vpop.f32.mrf.mxu1 }
 0x814   : > { %v2466_v25 = vpack.c.bf16 %v2464_v23, %v2464_v23 }
 0x816   : > { %2634 = vmatprep.mubr.bf16.mxu0 %v2466_v25 }
 0x817   : > { %2635 = vmatmul.mubr.bf16.vlgmr.msra.gmra.mxu0 %v2465_v26 }
 0x8d7   : > { %v3122_v28 = vpop.f32.mrf.mxu0 }
 0x8d9   : > { %v3123_v30 = vpop.f32.mrf.mxu0 }
 0x8da   : > { %v3124_v31 = vadd.f32 %v3123_v30, %v3122_v28 }
 0x8db   : > { %v3125_v34 = vpop.f32.mrf.mxu0 }
 0x8dc   : > { %v2637_v35 = vadd.f32 %v3124_v31, %v3046_v32 }
 0x8dd   : > { %v3126_v36 = vpop.f32.mrf.mxu0 }
 0x8de   : > { %v2642_v37 = vadd.f32 %v2637_v35, %v2312_v10 }
 0x8e0   : > { %2645 = vadd.xlane.f32.xlu0 %v2642_v37 }
 0x969   : > { %v2646_v38 = vpop.xlane.xlu0 %2645 }
 0x96a   : > { %v2647_v39 = vmul.f32 0.0078125, %v2646_v38 }
 0x96c   : > { %v2648_v18 = vsub.f32 %v2642_v37, %v2647_v39 }
 0x96e   : > { %v2649_v40 = vmul.f32 %v2648_v18, %v2648_v18 }
 0x970   : > { %2650 = vadd.xlane.f32.xlu0 %v2649_v40 }
 0x9f9   : > { %v2651_v41 = vpop.xlane.xlu0 %2650 }
 0x9fa   : > { %v2652_v42 = vmul.f32 0.0078125, %v2651_v41 }
 0x9fc   : > { %v2653_v43 = vadd.f32 1e-05, %v2652_v42 }
 0x9fe   : > { %3466 = vrsqrt.f32 %v2653_v43 }
 0xa0b   : > { %v3467_v44 = vpop.eup %3466 }
 0xa0c   : > { %v2655_v46 = vmul.f32 %v3467_v44, %v2648_v18 }
 0xa0e   : > { %v2662_v48 = vmul.f32 %v3063_v45, %v2655_v46 }
 0xa10   : > { %v2669_v49 = vadd.f32 %v3064_v47, %v2662_v48 }
 0xa12   : > { %2670 = vst [vmem:[%s4237_s7] sm:$0xff] %v2669_v49 }
 0xa13   : > { %3677 = shalt.err (!%p3674_p7)
}
 0xa14   : > { %s3678_s16 = scalar_lea.hbm %s2683_s29, 128  ;;  %s3682_s18 = scalar_lea.hbm %s4723_s14, 256 }
 0xa15   : > { %p3679_p8 = scmp.ne.s32.totalorder %s2683_s29, %s3678_s16  ;;  %p3683_p5 = scmp.lt.s32.totalorder %s2683_s29, %s4723_s14 }
 0xa16   : > { %p3684_p0 = scmp.lt.s32.totalorder %s3682_s18, %s3678_s16 }
 0xa17   : > { %p3680_p13 = pnand %p3679_p8, %p3991_p12 }
 0xa18   : > { %p3685_p11 = por %p3684_p0, %p3683_p5 }
 0xa19   : > { %p3681_p2 = pneg %p3680_p13 }
 0xa1b   : > { %p3686_p4 = pnand %p3685_p11, %p3681_p2 }
 0xa1d   : > { %3689 = shalt.err (!%p3686_p4)
}
 0xa1e   : > { %3236 = dma.vmem_to_hbm [thread:$0]  (%p3991_p12), %s2686_s10, 128, %s2683_s29, %s2672_s30  }
 0xa1f PF: > { %s4724_s25 = sld [smem:[#allocation29_spill]] }
 0xa20   : > { %s4725_s1 = sld [smem:[#allocation23_spill]] }
 0xa21   : > { %s4726_s28 = sld [smem:[#allocation34_spill]] }
 0xa25   : > { %p3265_p9 = scmp.ge.s32.totalorder %s4724_s25, 2 }
 0xa26   : > { %s2697_s5 = sand.u32 1, %s4725_s1  }
 0xa27   : > { %p4727_p1 = scmp.ne.s32.totalorder %s4726_s28, 0  ;;  %s2698_s27 = scalar_lea.sflag [#allocation4], %s2697_s5 }
 0xa29   : > { %p3261_p10 = pnand %p3265_p9, %p4727_p1 }
 0xa2b   : > { %p3262_p3 = pneg %p3261_p10 }
 0xa2d   : > { %3755 = dma.done.wait (%p3262_p3), %s2698_s27, 128  }
 0xa2e   : > { %3757 = vsyncadd (%p3262_p3), %s2698_s27, 4294967168  ;;  %s39_s23 = sadd.s32 1, %s4724_s25   ;;  %s4728_s29 = sld [smem:[#allocation21_spill]] }
 0xa2f   : > { %p36_p6 = scmp.ge.s32.totalorder %s39_s23, 6   ;;  %s4729_s30 = sld [smem:[#allocation22_spill]] }
 0xa30   : > { %s4730_s15 = sld [smem:[#allocation38_spill]]  ;;  %s4737_s19 = smov %s3792_s21 }
 0xa31   : > { %s4731_s16 = sld [smem:[#allocation24_spill]] }
 0xa32   : > { %s4732_s17 = sld [smem:[#allocation25_spill]] }
 0xa33   : > { %s4733_s18 = sld [smem:[#allocation39_spill]] }
 0xa34   : > { %s4734_s20 = sld [smem:[#allocation28_spill]] }
 0xa35   : > { %s4735_s4 = sld [smem:[#allocation36_spill]] }
 0xa36   : > { %s4736_s22 = sld [smem:[#allocation37_spill]] }
 0xa37   :  { %38 = sbr.rel (!%p36_p6) target bundleno = 31 (0x1f), region = 218 }
 0xa3b   : > { %s4738_s21 = smov %s4735_s4 }
 0xa3c   :  { %2703 = vsyncpa [#allocation3], 1 }
 0xa3d   :  { %2705 = vsyncpa [#allocation3 + $0x1], 1 }
 0xa3e   :  { %2706 = vsyncpa [#allocation6], 1 }
 0xa3f   :  { %2708 = vsyncpa [#allocation6 + $0x1], 1 }
 0xa40   :  { %2709 = vsyncpa [#allocation9], 1 }
 0xa41   :  { %2711 = vsyncpa [#allocation9 + $0x1], 1 }
 0xa42   :  { %2712 = vsyncpa [#allocation12], 1 }
 0xa43   :  { %2714 = vsyncpa [#allocation12 + $0x1], 1 }
 0xa44   :  { %2715 = vsyncpa [#allocation4], 1 }
 0xa45   :  { %2717 = vsyncpa [#allocation4 + $0x1], 1 }

</bundles_post_ra>
